<compile_context>
chip_gen: v7x
topology: tpu7x:2x2x1
jax: 0.10.0
libtpu: 0.0.40
codegen_flags: <defaults>
</compile_context>

<pallas_src>
import functools

import jax
import jax.numpy as jnp
from jax.experimental import pallas as pl
from jax.experimental.pallas import tpu as pltpu

EPS = 1e-6  # RMSNorm eps (matches the PyTorch default)


# ---------------------------------------------------------------------------
# Kernel 1: fused BitLinear q/k/v projection
#   x       : (B, T, C)  f32
#   gamma   : (3, C)     f32   RMSNorm weights for (q, k, v)
#   wscale  : (3, 1)     f32   per-tensor weight scales (q's has D**-0.5 folded in)
#   w_tern  : (3, C, D)  bf16  ternary {-1,0,1} weights, already transposed
# outputs:
#   q  : (B, T, D)   bf16
#   kv : (B, T, 2*D) bf16   (k | v fused along the lane dim)
# ---------------------------------------------------------------------------
def _qkv_kernel(x_ref, gamma_ref, wscale_ref, w_ref, q_ref, kv_ref):
    x = x_ref[...].astype(jnp.float32)                        # (tp, C)

    # RMSNorm rsqrt part is shared by the three projections (hoisted once).
    inv_rms = jax.lax.rsqrt(jnp.mean(x * x, axis=-1, keepdims=True) + EPS)
    xn = x * inv_rms                                          # (tp, C)

    gamma = gamma_ref[...]                                    # (3, C)
    wscale = wscale_ref[...]                                  # (3, 1)

    ys = []
    for j in range(3):                                        # static unroll
        xg = xn * gamma[j:j + 1, :]                           # (tp, C)
        # activation fake-quant: per-token 8-bit.  |xg|*127/amax <= 127 by
        # construction, so no clip is needed.
        amax = jnp.maximum(jnp.max(jnp.abs(xg), axis=-1, keepdims=True), 1e-5)
        xi = jnp.round(xg * (127.0 / amax))
        # integer-valued operands are exact in bf16 -> full-rate MXU, f32 acc
        acc = jnp.dot(xi.astype(jnp.bfloat16), w_ref[j],
                      preferred_element_type=jnp.float32)     # (tp, D)
        # undo activation scale (per row) and weight scale (per tensor) in f32
        ys.append(acc * (amax * (1.0 / 127.0)) * wscale[j:j + 1, :])

    q_ref[...] = ys[0].astype(q_ref.dtype)
    kv_ref[...] = jnp.concatenate([ys[1], ys[2]], axis=-1).astype(kv_ref.dtype)


# ---------------------------------------------------------------------------
# Kernel 2: causal flash attention (online softmax).
#   q is already pre-scaled by head_size ** -0.5 (folded into its wscale).
#   kv is the fused (tk, 2*D) bf16 block: k = kv[:, :D], v = kv[:, D:].
# ---------------------------------------------------------------------------
def _flash_kernel(q_ref, kv_ref, o_ref, m_scr, l_scr, acc_scr, *,
                  tq, tk, head_size):
    D = head_size
    i = pl.program_id(1)          # query tile index
    j = pl.program_id(2)          # key/value tile index (innermost, "arbitrary")

    @pl.when(j == 0)
    def _init():
        m_scr[...] = jnp.full_like(m_scr, -jnp.inf)
        l_scr[...] = jnp.zeros_like(l_scr)
        acc_scr[...] = jnp.zeros_like(acc_scr)

    def _update(apply_mask):
        q = q_ref[...]                                        # (tq, D)  bf16
        kv = kv_ref[...]                                      # (tk, 2D) bf16
        k = kv[:, :D]
        v = kv[:, D:]
        # contraction over D without transposing k through the XLU
        s = jax.lax.dot_general(q, k, (((1,), (1,)), ((), ())),
                                preferred_element_type=jnp.float32)  # (tq, tk)
        if apply_mask:   # only on the diagonal block
            row = i * tq + jax.lax.broadcasted_iota(jnp.int32, (tq, tk), 0)
            col = j * tk + jax.lax.broadcasted_iota(jnp.int32, (tq, tk), 1)
            s = jnp.where(col <= row, s, -jnp.inf)

        m_prev = m_scr[...]
        m_new = jnp.maximum(m_prev, jnp.max(s, axis=-1, keepdims=True))
        alpha = jnp.exp(m_prev - m_new)                       # exp(-inf)=0 on 1st blk
        p = jnp.exp(s - m_new)                                # masked -> exp(-inf)=0
        l_scr[...] = alpha * l_scr[...] + jnp.sum(p, axis=-1, keepdims=True)
        acc_scr[...] = alpha * acc_scr[...] + jnp.dot(
            p.astype(jnp.bfloat16), v, preferred_element_type=jnp.float32)
        m_scr[...] = m_new

    first_row = i * tq
    last_row = i * tq + (tq - 1)
    first_col = j * tk
    last_col = j * tk + (tk - 1)

    # Diagonal block: straddles the causal boundary -> apply the mask.
    @pl.when(jnp.logical_and(first_col <= last_row, last_col > first_row))
    def _diag():
        _update(True)

    # Strictly-below-diagonal block: fully unmasked -> no iota/compare/where.
    @pl.when(last_col <= first_row)
    def _below():
        _update(False)

    # (Fully-above-diagonal blocks: neither branch fires; the clamped kv
    #  index_map also avoids fetching them.)

    @pl.when(j == pl.num_programs(2) - 1)
    def _finalize():
        inv_l = pl.reciprocal(l_scr[...], approx=True)        # EUP slot, ~free
        o_ref[...] = (acc_scr[...] * inv_l).astype(o_ref.dtype)


# ---------------------------------------------------------------------------
# Host-side (wrapper) helpers
# ---------------------------------------------------------------------------
def _weight_fake_quant_ternary(w):
    """w: (out, in) f32 -> (ternary (out, in) f32, per-tensor scale scalar)."""
    ws = jnp.maximum(jnp.mean(jnp.abs(w)), 1e-5)
    tern = jnp.clip(jnp.round(w / ws), -1.0, 1.0)
    return tern, ws


def head_forward(x, params, *, tp=256, tq=128, tk=128):
    """Forward pass of `Head` (eval-mode dropout == identity).

    x       : (B, T, C) f32
    params  : dict with 'wq','wk','wv' (D, C) torch-layout weights and
              'gq','gk','gv' (C,) RMSNorm weights.
    returns : (B, T, D) f32
    """
    B, T, C = x.shape
    D = params["wq"].shape[0]

    # --- quantize weights once, fuse into one bf16 operand -----------------
    terns, scales = [], []
    for name in ("wq", "wk", "wv"):
        t, s = _weight_fake_quant_ternary(params[name])
        terns.append(t.T)                                     # (C, D)
        scales.append(s)
    w_fused = jnp.stack(terns, axis=0).astype(jnp.bfloat16)   # (3, C, D)
    # fold attention scale head_size**-0.5 into q's weight scale (applied once)
    wscale = jnp.stack([scales[0] * (D ** -0.5), scales[1], scales[2]]
                       ).reshape(3, 1).astype(jnp.float32)
    gamma = jnp.stack([params["gq"], params["gk"], params["gv"]]
                      ).astype(jnp.float32)                   # (3, C)

    tp, tq, tk = min(tp, T), min(tq, T), min(tk, T)
    assert T % tp == 0 and T % tq == 0 and T % tk == 0
    assert tp % 8 == 0 and tq % 8 == 0 and tk % 8 == 0

    vmem_budget = 48 * 1024 * 1024   # under v7x's 64 MiB physical VMEM

    # --- kernel 1: fused q/kv BitLinear projection ---------------------------
    q, kv = pl.pallas_call(
        _qkv_kernel,
        grid=(B, T // tp),
        in_specs=[
            pl.BlockSpec((None, tp, C), lambda b, i: (b, i, 0)),   # x tile
            pl.BlockSpec((3, C), lambda b, i: (0, 0)),             # gammas
            pl.BlockSpec((3, 1), lambda b, i: (0, 0)),             # weight scales
            pl.BlockSpec((3, C, D), lambda b, i: (0, 0, 0)),       # ternary weights
        ],
        out_specs=[
            pl.BlockSpec((None, tp, D), lambda b, i: (b, i, 0)),       # q
            pl.BlockSpec((None, tp, 2 * D), lambda b, i: (b, i, 0)),   # k|v fused
        ],
        out_shape=(
            jax.ShapeDtypeStruct((B, T, D), jnp.bfloat16),
            jax.ShapeDtypeStruct((B, T, 2 * D), jnp.bfloat16),
        ),
        compiler_params=pltpu.CompilerParams(
            dimension_semantics=("parallel", "parallel"),
            vmem_limit_bytes=vmem_budget),
    )(x, gamma, wscale, w_fused)

    # --- kernel 2: causal flash attention -----------------------------------
    # Clamp the kv block index to the diagonal block: fully-masked kv blocks
    # see an unchanged block index -> no DMA is issued for them.
    def _kv_index(b, i, j):
        diag = (i * tq + tq - 1) // tk
        return (b, jnp.minimum(j, diag), 0)

    out = pl.pallas_call(
        functools.partial(_flash_kernel, tq=tq, tk=tk, head_size=D),
        grid=(B, T // tq, T // tk),
        in_specs=[
            pl.BlockSpec((None, tq, D), lambda b, i, j: (b, i, 0)),      # q
            pl.BlockSpec((None, tk, 2 * D), _kv_index),                  # k|v
        ],
        out_specs=pl.BlockSpec((None, tq, D), lambda b, i, j: (b, i, 0)),
        out_shape=jax.ShapeDtypeStruct((B, T, D), jnp.float32),
        scratch_shapes=[
            pltpu.VMEM((tq, 1), jnp.float32),   # running max  m_i
            pltpu.VMEM((tq, 1), jnp.float32),   # running sum  l_i
            pltpu.VMEM((tq, D), jnp.float32),   # output accumulator
        ],
        compiler_params=pltpu.CompilerParams(
            dimension_semantics=("parallel", "parallel", "arbitrary"),
            vmem_limit_bytes=vmem_budget),
    )(q, kv)
    # TODO(synk): dropout is treated as eval-mode identity; training-mode
    # dropout on the attention weights would need pltpu.prng_* inside kernel 2.
    return out


# ---------------------------------------------------------------------------
# Pure-JAX reference (mirrors the PyTorch module) for a correctness check
# ---------------------------------------------------------------------------
def _rms_norm_ref(x, g):
    return x * jax.lax.rsqrt(jnp.mean(x * x, axis=-1, keepdims=True) + EPS) * g


def _act_quant_ref(x):
    amax = jnp.maximum(jnp.max(jnp.abs(x), axis=-1, keepdims=True), 1e-5)
    scale = 127.0 / amax
    return jnp.clip(jnp.round(x * scale), -128.0, 127.0) / scale


def _weight_quant_ref(w):
    ws = jnp.maximum(jnp.mean(jnp.abs(w)), 1e-5)
    return jnp.clip(jnp.round(w / ws), -1.0, 1.0) * ws


def _bitlinear_ref(x, w, g):
    xq = _act_quant_ref(_rms_norm_ref(x, g))
    wq = _weight_quant_ref(w)
    return xq @ wq.T


def head_reference(x, params):
    B, T, C = x.shape
    D = params["wq"].shape[0]
    q = _bitlinear_ref(x, params["wq"], params["gq"])
    k = _bitlinear_ref(x, params["wk"], params["gk"])
    v = _bitlinear_ref(x, params["wv"], params["gv"])
    wei = jnp.einsum("btd,bsd->bts", q, k) * (D ** -0.5)
    mask = jnp.tril(jnp.ones((T, T), dtype=bool))
    wei = jnp.where(mask[None], wei, -jnp.inf)
    wei = jax.nn.softmax(wei, axis=-1)
    return jnp.einsum("bts,bsd->btd", wei, v)


# ---------------------------------------------------------------------------
if __name__ == "__main__":
    key = jax.random.PRNGKey(0)
    B, T, C, D = 2, 128, 64, 32          # batch, block_size, n_embd, head_size
    kx, kq, kk, kv = jax.random.split(key, 4)
    x = jax.random.normal(kx, (B, T, C), dtype=jnp.float32)
    params = {
        "wq": 0.1 * jax.random.normal(kq, (D, C), dtype=jnp.float32),
        "wk": 0.1 * jax.random.normal(kk, (D, C), dtype=jnp.float32),
        "wv": 0.1 * jax.random.normal(kv, (D, C), dtype=jnp.float32),
        "gq": jnp.ones((C,), jnp.float32),   # RMSNorm weights (default init)
        "gk": jnp.ones((C,), jnp.float32),
        "gv": jnp.ones((C,), jnp.float32),
    }

    out = head_forward(x, params)
    out = jax.block_until_ready(out)

    ref = head_reference(x, params)
    assert out.shape == (B, T, D)
    max_err = float(jnp.max(jnp.abs(out - ref)))
    if not bool(jnp.allclose(out, ref, rtol=2e-2, atol=2e-2)):
        raise AssertionError(f"Pallas Head mismatch vs reference, max |err| = {max_err}")
    print("KERNEL_OK")
</pallas_src>

<mosaic_0001>
module attributes {stable_mosaic.version = 11 : i64} {
  func.func @_qkv_kernel(%arg0: i32, %arg1: i32, %arg2: memref<1x128x64xf32, #tpu.memory_space<vmem>>, %arg3: memref<3x64xf32, #tpu.memory_space<vmem>>, %arg4: memref<3x1xf32, #tpu.memory_space<vmem>>, %arg5: memref<3x64x32xbf16, #tpu.memory_space<vmem>>, %arg6: memref<1x128x32xbf16, #tpu.memory_space<vmem>>, %arg7: memref<1x128x64xbf16, #tpu.memory_space<vmem>>) attributes {dimension_semantics = [#tpu.dimension_semantics<parallel>, #tpu.dimension_semantics<parallel>], iteration_bounds = array<i64: 2, 1>, scalar_prefetch = 0 : i64, scratch_operands = 0 : i64, tpu.core_type = #tpu.core_type<tc>, window_params = [{transform_indices = @transform_0, window_bounds = array<i64: 1, 128, 64>}, {pipeline_mode = #tpu.pipeline_mode<synchronous>, transform_indices = @transform_1, window_bounds = array<i64: 3, 64>}, {pipeline_mode = #tpu.pipeline_mode<synchronous>, transform_indices = @transform_2, window_bounds = array<i64: 3, 1>}, {pipeline_mode = #tpu.pipeline_mode<synchronous>, transform_indices = @transform_3, window_bounds = array<i64: 3, 64, 32>}, {transform_indices = @transform_4, window_bounds = array<i64: 1, 128, 32>}, {transform_indices = @transform_5, window_bounds = array<i64: 1, 128, 64>}]} {
    %c0 = arith.constant 0 : index
    %c0_0 = arith.constant 0 : index
    %c0_1 = arith.constant 0 : index
    %0 = vector.load %arg2[%c0, %c0_0, %c0_1] : memref<1x128x64xf32, #tpu.memory_space<vmem>>, vector<1x128x64xf32>
    %1 = vector.shape_cast %0 : vector<1x128x64xf32> to vector<128x64xf32>
    %2 = arith.mulf %1, %1 : vector<128x64xf32>
    %cst = arith.constant dense<0.000000e+00> : vector<128xf32>
    %3 = vector.multi_reduction <add>, %2, %cst [1] : vector<128x64xf32> to vector<128xf32>
    %4 = vector.shape_cast %3 : vector<128xf32> to vector<128x1xf32>
    %cst_2 = arith.constant 6.400000e+01 : f32
    %5 = vector.broadcast %cst_2 : f32 to vector<128x1xf32>
    %6 = arith.divf %4, %5 : vector<128x1xf32>
    %cst_3 = arith.constant 9.99999997E-7 : f32
    %7 = vector.broadcast %cst_3 : f32 to vector<128x1xf32>
    %8 = arith.addf %6, %7 : vector<128x1xf32>
    %9 = math.rsqrt %8 : vector<128x1xf32>
    %10 = vector.broadcast %9 : vector<128x1xf32> to vector<128x64xf32>
    %11 = arith.mulf %1, %10 : vector<128x64xf32>
    %c0_4 = arith.constant 0 : index
    %c0_5 = arith.constant 0 : index
    %12 = vector.load %arg3[%c0_4, %c0_5] : memref<3x64xf32, #tpu.memory_space<vmem>>, vector<3x64xf32>
    %c0_6 = arith.constant 0 : index
    %c0_7 = arith.constant 0 : index
    %13 = vector.load %arg4[%c0_6, %c0_7] : memref<3x1xf32, #tpu.memory_space<vmem>>, vector<3x1xf32>
    %14 = vector.extract_strided_slice %12 {offsets = [0, 0], sizes = [1, 64], strides = [1, 1]} : vector<3x64xf32> to vector<1x64xf32>
    %15 = vector.broadcast %14 : vector<1x64xf32> to vector<128x64xf32>
    %16 = arith.mulf %11, %15 : vector<128x64xf32>
    %17 = math.absf %16 : vector<128x64xf32>
    %cst_8 = arith.constant dense<0xFF800000> : vector<128xf32>
    %18 = vector.multi_reduction <maximumf>, %17, %cst_8 [1] : vector<128x64xf32> to vector<128xf32>
    %19 = vector.shape_cast %18 : vector<128xf32> to vector<128x1xf32>
    %cst_9 = arith.constant 9.99999974E-6 : f32
    %20 = vector.broadcast %cst_9 : f32 to vector<128x1xf32>
    %21 = arith.maximumf %19, %20 : vector<128x1xf32>
    %cst_10 = arith.constant 1.270000e+02 : f32
    %22 = vector.broadcast %cst_10 : f32 to vector<128x1xf32>
    %23 = arith.divf %22, %21 : vector<128x1xf32>
    %24 = vector.broadcast %23 : vector<128x1xf32> to vector<128x64xf32>
    %25 = arith.mulf %16, %24 : vector<128x64xf32>
    %26 = math.roundeven %25 : vector<128x64xf32>
    %27 = arith.truncf %26 : vector<128x64xf32> to vector<128x64xbf16>
    %c0_11 = arith.constant 0 : index
    %c0_12 = arith.constant 0 : index
    %c0_13 = arith.constant 0 : index
    %28 = vector.load %arg5[%c0_11, %c0_12, %c0_13] : memref<3x64x32xbf16, #tpu.memory_space<vmem>>, vector<1x64x32xbf16>
    %29 = vector.shape_cast %28 : vector<1x64x32xbf16> to vector<64x32xbf16>
    %cst_14 = arith.constant dense<0.000000e+00> : vector<128x32xf32>
    %30 = tpu.matmul %27, %29, %cst_14 {dimension_numbers = #tpu.dot_dimension_numbers<[1], [0], [0], [1], [0, 0, 1, 1], [], []>} : vector<128x64xbf16>, vector<64x32xbf16>, vector<128x32xf32> -> vector<128x32xf32>
    %cst_15 = arith.constant 0.00787401571 : f32
    %31 = vector.broadcast %cst_15 : f32 to vector<128x1xf32>
    %32 = arith.mulf %21, %31 : vector<128x1xf32>
    %33 = vector.broadcast %32 : vector<128x1xf32> to vector<128x32xf32>
    %34 = arith.mulf %30, %33 : vector<128x32xf32>
    %35 = vector.extract_strided_slice %13 {offsets = [0, 0], sizes = [1, 1], strides = [1, 1]} : vector<3x1xf32> to vector<1x1xf32>
    %36 = vector.broadcast %35 : vector<1x1xf32> to vector<128x32xf32>
    %37 = arith.mulf %34, %36 : vector<128x32xf32>
    %38 = vector.extract_strided_slice %12 {offsets = [1, 0], sizes = [1, 64], strides = [1, 1]} : vector<3x64xf32> to vector<1x64xf32>
    %39 = vector.broadcast %38 : vector<1x64xf32> to vector<128x64xf32>
    %40 = arith.mulf %11, %39 : vector<128x64xf32>
    %41 = math.absf %40 : vector<128x64xf32>
    %cst_16 = arith.constant dense<0xFF800000> : vector<128xf32>
    %42 = vector.multi_reduction <maximumf>, %41, %cst_16 [1] : vector<128x64xf32> to vector<128xf32>
    %43 = vector.shape_cast %42 : vector<128xf32> to vector<128x1xf32>
    %cst_17 = arith.constant 9.99999974E-6 : f32
    %44 = vector.broadcast %cst_17 : f32 to vector<128x1xf32>
    %45 = arith.maximumf %43, %44 : vector<128x1xf32>
    %cst_18 = arith.constant 1.270000e+02 : f32
    %46 = vector.broadcast %cst_18 : f32 to vector<128x1xf32>
    %47 = arith.divf %46, %45 : vector<128x1xf32>
    %48 = vector.broadcast %47 : vector<128x1xf32> to vector<128x64xf32>
    %49 = arith.mulf %40, %48 : vector<128x64xf32>
    %50 = math.roundeven %49 : vector<128x64xf32>
    %51 = arith.truncf %50 : vector<128x64xf32> to vector<128x64xbf16>
    %c1 = arith.constant 1 : index
    %c0_19 = arith.constant 0 : index
    %c0_20 = arith.constant 0 : index
    %52 = vector.load %arg5[%c1, %c0_19, %c0_20] : memref<3x64x32xbf16, #tpu.memory_space<vmem>>, vector<1x64x32xbf16>
    %53 = vector.shape_cast %52 : vector<1x64x32xbf16> to vector<64x32xbf16>
    %cst_21 = arith.constant dense<0.000000e+00> : vector<128x32xf32>
    %54 = tpu.matmul %51, %53, %cst_21 {dimension_numbers = #tpu.dot_dimension_numbers<[1], [0], [0], [1], [0, 0, 1, 1], [], []>} : vector<128x64xbf16>, vector<64x32xbf16>, vector<128x32xf32> -> vector<128x32xf32>
    %cst_22 = arith.constant 0.00787401571 : f32
    %55 = vector.broadcast %cst_22 : f32 to vector<128x1xf32>
    %56 = arith.mulf %45, %55 : vector<128x1xf32>
    %57 = vector.broadcast %56 : vector<128x1xf32> to vector<128x32xf32>
    %58 = arith.mulf %54, %57 : vector<128x32xf32>
    %59 = vector.extract_strided_slice %13 {offsets = [1, 0], sizes = [1, 1], strides = [1, 1]} : vector<3x1xf32> to vector<1x1xf32>
    %60 = vector.broadcast %59 : vector<1x1xf32> to vector<128x32xf32>
    %61 = arith.mulf %58, %60 : vector<128x32xf32>
    %62 = vector.extract_strided_slice %12 {offsets = [2, 0], sizes = [1, 64], strides = [1, 1]} : vector<3x64xf32> to vector<1x64xf32>
    %63 = vector.broadcast %62 : vector<1x64xf32> to vector<128x64xf32>
    %64 = arith.mulf %11, %63 : vector<128x64xf32>
    %65 = math.absf %64 : vector<128x64xf32>
    %cst_23 = arith.constant dense<0xFF800000> : vector<128xf32>
    %66 = vector.multi_reduction <maximumf>, %65, %cst_23 [1] : vector<128x64xf32> to vector<128xf32>
    %67 = vector.shape_cast %66 : vector<128xf32> to vector<128x1xf32>
    %cst_24 = arith.constant 9.99999974E-6 : f32
    %68 = vector.broadcast %cst_24 : f32 to vector<128x1xf32>
    %69 = arith.maximumf %67, %68 : vector<128x1xf32>
    %cst_25 = arith.constant 1.270000e+02 : f32
    %70 = vector.broadcast %cst_25 : f32 to vector<128x1xf32>
    %71 = arith.divf %70, %69 : vector<128x1xf32>
    %72 = vector.broadcast %71 : vector<128x1xf32> to vector<128x64xf32>
    %73 = arith.mulf %64, %72 : vector<128x64xf32>
    %74 = math.roundeven %73 : vector<128x64xf32>
    %75 = arith.truncf %74 : vector<128x64xf32> to vector<128x64xbf16>
    %c2 = arith.constant 2 : index
    %c0_26 = arith.constant 0 : index
    %c0_27 = arith.constant 0 : index
    %76 = vector.load %arg5[%c2, %c0_26, %c0_27] : memref<3x64x32xbf16, #tpu.memory_space<vmem>>, vector<1x64x32xbf16>
    %77 = vector.shape_cast %76 : vector<1x64x32xbf16> to vector<64x32xbf16>
    %cst_28 = arith.constant dense<0.000000e+00> : vector<128x32xf32>
    %78 = tpu.matmul %75, %77, %cst_28 {dimension_numbers = #tpu.dot_dimension_numbers<[1], [0], [0], [1], [0, 0, 1, 1], [], []>} : vector<128x64xbf16>, vector<64x32xbf16>, vector<128x32xf32> -> vector<128x32xf32>
    %cst_29 = arith.constant 0.00787401571 : f32
    %79 = vector.broadcast %cst_29 : f32 to vector<128x1xf32>
    %80 = arith.mulf %69, %79 : vector<128x1xf32>
    %81 = vector.broadcast %80 : vector<128x1xf32> to vector<128x32xf32>
    %82 = arith.mulf %78, %81 : vector<128x32xf32>
    %83 = vector.extract_strided_slice %13 {offsets = [2, 0], sizes = [1, 1], strides = [1, 1]} : vector<3x1xf32> to vector<1x1xf32>
    %84 = vector.broadcast %83 : vector<1x1xf32> to vector<128x32xf32>
    %85 = arith.mulf %82, %84 : vector<128x32xf32>
    %86 = arith.truncf %37 : vector<128x32xf32> to vector<128x32xbf16>
    %c0_30 = arith.constant 0 : index
    %c0_31 = arith.constant 0 : index
    %c0_32 = arith.constant 0 : index
    %87 = vector.load %arg6[%c0_30, %c0_31, %c0_32] : memref<1x128x32xbf16, #tpu.memory_space<vmem>>, vector<1x128x32xbf16>
    %88 = vector.shape_cast %87 : vector<1x128x32xbf16> to vector<128x32xbf16>
    %89 = vector.shape_cast %86 : vector<128x32xbf16> to vector<1x128x32xbf16>
    tpu.vector_store %arg6[%c0_30, %c0_31, %c0_32], %89 {strides = array<i32>} : memref<1x128x32xbf16, #tpu.memory_space<vmem>>, vector<1x128x32xbf16>,
    %90 = tpu.concatenate %61, %85 in 1 : vector<128x32xf32>, vector<128x32xf32> -> vector<128x64xf32>
    %91 = arith.truncf %90 : vector<128x64xf32> to vector<128x64xbf16>
    %c0_33 = arith.constant 0 : index
    %c0_34 = arith.constant 0 : index
    %c0_35 = arith.constant 0 : index
    %92 = vector.load %arg7[%c0_33, %c0_34, %c0_35] : memref<1x128x64xbf16, #tpu.memory_space<vmem>>, vector<1x128x64xbf16>
    %93 = vector.shape_cast %92 : vector<1x128x64xbf16> to vector<128x64xbf16>
    %94 = vector.shape_cast %91 : vector<128x64xbf16> to vector<1x128x64xbf16>
    tpu.vector_store %arg7[%c0_33, %c0_34, %c0_35], %94 {strides = array<i32>} : memref<1x128x64xbf16, #tpu.memory_space<vmem>>, vector<1x128x64xbf16>,
    return
  }
  func.func @transform_0(%arg0: i32, %arg1: i32) -> (i32, i32, i32) {
    %c0_i32 = arith.constant 0 : i32
    %c0_i32_0 = arith.constant 0 : i32
    return %arg0, %arg1, %c0_i32 : i32, i32, i32
  }
  func.func @transform_1(%arg0: i32, %arg1: i32) -> (i32, i32) {
    %c0_i32 = arith.constant 0 : i32
    %c0_i32_0 = arith.constant 0 : i32
    %c0_i32_1 = arith.constant 0 : i32
    return %c0_i32, %c0_i32_0 : i32, i32
  }
  func.func @transform_2(%arg0: i32, %arg1: i32) -> (i32, i32) {
    %c0_i32 = arith.constant 0 : i32
    %c0_i32_0 = arith.constant 0 : i32
    %c0_i32_1 = arith.constant 0 : i32
    return %c0_i32, %c0_i32_0 : i32, i32
  }
  func.func @transform_3(%arg0: i32, %arg1: i32) -> (i32, i32, i32) {
    %c0_i32 = arith.constant 0 : i32
    %c0_i32_0 = arith.constant 0 : i32
    %c0_i32_1 = arith.constant 0 : i32
    %c0_i32_2 = arith.constant 0 : i32
    return %c0_i32, %c0_i32_0, %c0_i32_1 : i32, i32, i32
  }
  func.func @transform_4(%arg0: i32, %arg1: i32) -> (i32, i32, i32) {
    %c0_i32 = arith.constant 0 : i32
    %c0_i32_0 = arith.constant 0 : i32
    return %arg0, %arg1, %c0_i32 : i32, i32, i32
  }
  func.func @transform_5(%arg0: i32, %arg1: i32) -> (i32, i32, i32) {
    %c0_i32 = arith.constant 0 : i32
    %c0_i32_0 = arith.constant 0 : i32
    return %arg0, %arg1, %c0_i32 : i32, i32, i32
  }
}

</mosaic_0001>

<bundles_post_ra>
// kernel: tpu_custom_call.1
= control target key start
LH: loop header
LB: loop body
LE: loop exit
PB: predicated region body
PF: predicated region fallthrough
CT: control target
= control target key end

     0   :  { %s2512_s18 = smov 0   ;;  %s2514_s19 = smov 0   ;;  %s3632_s0 = inlined_call_operand.vmem [shape: f32[2,128,64], index: 0, kind: input, shape index: {}]   ;;  %s3633_s1 = inlined_call_operand.vmem [shape: f32[3,64], index: 1, kind: input, shape index: {}]   ;;  %s3634_s2 = inlined_call_operand.vmem [shape: f32[3,1], index: 2, kind: input, shape index: {}]   ;;  %s3635_s3 = inlined_call_operand.vmem [shape: bf16[3,64,32], index: 3, kind: input, shape index: {}]   ;;  %s3636_s4 = inlined_call_operand.vmem [shape: bf16[2,128,32], index: 4, kind: output, shape index: {0}]   ;;  %s3637_s5 = inlined_call_operand.vmem [shape: bf16[2,128,64], index: 5, kind: output, shape index: {1}]  }
   0x1   :  { %s2516_s20 = smov 0  }
   0x2 LB: > { %s28_s21 = sadd.s32 1, %s2475_s19  ;;  %p1954_p0 = scmp.ge.s32.totalorder %s2479_s20, 1  ;;  %s2479_s20 = sphi %s2516_s20, %s16_s20   ;;  %s2475_s19 = sphi %s2514_s19, %s3769_s19   ;;  %s2471_s18 = sphi %s2512_s18, %s3768_s18  }
   0x3   : > { %p30_p1 = scmp.ge.s32.totalorder %s28_s21, 2  ;;  %p213_p2 = scmp.lt.s32.totalorder %s2479_s20, 3 }
   0x5   : > { %s3771_s21 = smov (%p30_p1, %s28_s21), 0  ;;  %p214_p3 = pnand %p1954_p0, %p213_p2 }
   0x7   : > { %217 = sbr.rel (%p214_p3) target bundleno = 740 (0x2e4), region = 36 }
   0xe   : > { %p259_p4 = scmp.lt.s32.totalorder %s2471_s18, 1  ;;  %vm321_vm0 = vcmask 523264   ;;  %v437_v46 = vlaneseq  ;;  %v2639_v50 = vld [vmem:[%s3633_s1] sm:$0x7]  ;;  %vm1634_vm1 = vcmask 257024   ;;  %s2481_s15 = smov 32  }
   0xf   : > { %vm1715_vm2 = vcmask 261120   ;;  %vm1796_vm3 = vcmask 519168  }
  0x10   : > { %s3773_s18 = smov (!%p259_p4, %s2471_s18), 1  ;;  %v2634_v49 = vshrl.u32 %v437_v46, 7 }
  0x11   : > { %s2047_s22 = sshll.u32 %s3773_s18, 7  ;;  %s2048_s9 = sshll.u32 %s3773_s18, 6 }
  0x12   : > { %s2536_s25 = scalar_lea.vmem %s3632_s0, %s2047_s22  ;;  %v816_v51 = vsub.s32 1, %v2634_v49  ;;  %s3360_s12 = scalar_lea.vmem %s3636_s4, %s2048_s9 }
  0x13   : > { %v2539_v0 = vld [vmem:[%s2536_s25] sm:$0xff]  ;;  %v2542_v1 = vld [vmem:[%s2536_s25 + $0x10] sm:$0xff]  ;;  %v2545_v2 = vld [vmem:[%s2536_s25 + $0x8] sm:$0xff]  ;;  %s3559_s22 = scalar_lea.vmem %s3637_s5, %s2048_s9 }
  0x14   : > { %v305_v3 = vmul.f32 %v2539_v0, %v2539_v0  ;;  %v307_v4 = vmul.f32 %v2542_v1, %v2542_v1  ;;  %v306_v5 = vmul.f32 %v2545_v2, %v2545_v2  ;;  %v2554_v6 = vld [vmem:[%s2536_s25 + $0x18] sm:$0xff]  ;;  %v2559_v8 = vld [vmem:[%s2536_s25 + $0x20] sm:$0xff]  ;;  %v2562_v9 = vld [vmem:[%s2536_s25 + $0x28] sm:$0xff]  ;;  %v2643_v52 = vrot.slane %v2639_v50, %v816_v51 }
  0x15   : > { %v308_v7 = vmul.f32 %v2554_v6, %v2554_v6  ;;  %v2567_v12 = vld [vmem:[%s2536_s25 + $0x30] sm:$0xff]  ;;  %v309_v15 = vmul.f32 %v2559_v8, %v2559_v8  ;;  %v310_v16 = vmul.f32 %v2562_v9, %v2562_v9  ;;  %v2576_v17 = vld [vmem:[%s2536_s25 + $0x38] sm:$0xff]  ;;  %v2585_v22 = vld [vmem:[%s2536_s25 + $0x40] sm:$0xff] }
  0x16   : > { %v322_v10 = vsel %vm321_vm0, %v305_v3, 0.0  ;;  %v328_v11 = vsel %vm321_vm0, %v307_v4, 0.0  ;;  %v325_v13 = vsel %vm321_vm0, %v306_v5, 0.0  ;;  %v311_v20 = vmul.f32 %v2567_v12, %v2567_v12  ;;  %v2588_v23 = vld [vmem:[%s2536_s25 + $0x48] sm:$0xff]  ;;  %v2597_v28 = vld [vmem:[%s2536_s25 + $0x50] sm:$0xff]  ;;  %v2600_v29 = vld [vmem:[%s2536_s25 + $0x58] sm:$0xff] }
  0x17   : > { %323 = vadd.xlane.f32.xlu0 %v322_v10  ;;  %329 = vadd.xlane.f32.xlu1 %v328_v11  ;;  %v331_v14 = vsel %vm321_vm0, %v308_v7, 0.0  ;;  %v334_v18 = vsel %vm321_vm0, %v309_v15, 0.0  ;;  %v337_v19 = vsel %vm321_vm0, %v310_v16, 0.0  ;;  %v312_v21 = vmul.f32 %v2576_v17, %v2576_v17  ;;  %v2609_v34 = vld [vmem:[%s2536_s25 + $0x60] sm:$0xff]  ;;  %v2612_v35 = vld [vmem:[%s2536_s25 + $0x68] sm:$0xff]  ;;  %v2621_v40 = vld [vmem:[%s2536_s25 + $0x70] sm:$0xff] }
  0x18   : > { %v340_v24 = vsel %vm321_vm0, %v311_v20, 0.0  ;;  %v313_v26 = vmul.f32 %v2585_v22, %v2585_v22  ;;  %v314_v27 = vmul.f32 %v2588_v23, %v2588_v23  ;;  %v315_v32 = vmul.f32 %v2597_v28, %v2597_v28  ;;  %v2624_v41 = vld [vmem:[%s2536_s25 + $0x78] sm:$0xff] }
  0x19   : > { %v343_v25 = vsel %vm321_vm0, %v312_v21, 0.0  ;;  %v316_v33 = vmul.f32 %v2600_v29, %v2600_v29  ;;  %v317_v38 = vmul.f32 %v2609_v34, %v2609_v34  ;;  %v318_v39 = vmul.f32 %v2612_v35, %v2612_v35 }
  0x1a   : > { %v346_v30 = vsel %vm321_vm0, %v313_v26, 0.0  ;;  %v349_v31 = vsel %vm321_vm0, %v314_v27, 0.0  ;;  %v352_v36 = vsel %vm321_vm0, %v315_v32, 0.0  ;;  %v319_v44 = vmul.f32 %v2621_v40, %v2621_v40 }
  0x1b   : > { %326 = vadd.xlane.f32.xlu0 %v325_v13  ;;  %332 = vadd.xlane.f32.xlu1 %v331_v14  ;;  %v355_v37 = vsel %vm321_vm0, %v316_v33, 0.0  ;;  %v358_v42 = vsel %vm321_vm0, %v317_v38, 0.0  ;;  %v361_v43 = vsel %vm321_vm0, %v318_v39, 0.0  ;;  %v320_v45 = vmul.f32 %v2624_v41, %v2624_v41 }
  0x1c   : > { %v364_v47 = vsel %vm321_vm0, %v319_v44, 0.0  ;;  %v439_v11 = vsub.s32 0, %v2634_v49 }
  0x1d   : > { %v367_v48 = vsel %vm321_vm0, %v320_v45, 0.0 }
  0x1e   : > { %v2647_v20 = vrot.slane %v2639_v50, %v439_v11 }
  0x1f   : > { %335 = vadd.xlane.f32.xlu0 %v334_v18  ;;  %338 = vadd.xlane.f32.xlu1 %v337_v19 }
  0x23   : > { %341 = vadd.xlane.f32.xlu0 %v340_v24  ;;  %344 = vadd.xlane.f32.xlu1 %v343_v25 }
  0x27   : > { %347 = vadd.xlane.f32.xlu0 %v346_v30  ;;  %350 = vadd.xlane.f32.xlu1 %v349_v31 }
  0x2b   : > { %353 = vadd.xlane.f32.xlu0 %v352_v36  ;;  %356 = vadd.xlane.f32.xlu1 %v355_v37 }
  0x2f   : > { %359 = vadd.xlane.f32.xlu0 %v358_v42  ;;  %362 = vadd.xlane.f32.xlu1 %v361_v43 }
  0x33   : > { %365 = vadd.xlane.f32.xlu0 %v364_v47  ;;  %368 = vadd.xlane.f32.xlu1 %v367_v48 }
  0xa4   : > { %v324_v53 = vpop.xlane.xlu0 %323  ;;  %v330_v54 = vpop.xlane.xlu1 %329 }
  0xa5   : > { %v371_v55 = vmul.f32 0.015625, %v324_v53  ;;  %v373_v56 = vmul.f32 0.015625, %v330_v54 }
  0xa7   : > { %v387_v57 = vadd.f32 1e-06, %v371_v55  ;;  %v389_v58 = vadd.f32 1e-06, %v373_v56 }
  0xa8   : > { %v327_v59 = vpop.xlane.xlu0 %326  ;;  %v333_v60 = vpop.xlane.xlu1 %332 }
  0xa9   : > { %2329 = vrsqrt.f32 %v387_v57  ;;  %v372_v61 = vmul.f32 0.015625, %v327_v59  ;;  %v374_v62 = vmul.f32 0.015625, %v333_v60 }
  0xaa   : > { %2331 = vrsqrt.f32 %v389_v58 }
  0xab   : > { %v388_v63 = vadd.f32 1e-06, %v372_v61  ;;  %v390_v3 = vadd.f32 1e-06, %v374_v62 }
  0xac   : > { %v336_v4 = vpop.xlane.xlu0 %335  ;;  %v339_v5 = vpop.xlane.xlu1 %338 }
  0xad   : > { %2333 = vrsqrt.f32 %v388_v63  ;;  %v375_v7 = vmul.f32 0.015625, %v336_v4  ;;  %v376_v10 = vmul.f32 0.015625, %v339_v5 }
  0xae   : > { %2335 = vrsqrt.f32 %v390_v3 }
  0xaf   : > { %v391_v13 = vadd.f32 1e-06, %v375_v7  ;;  %v392_v14 = vadd.f32 1e-06, %v376_v10 }
  0xb0   : > { %v342_v15 = vpop.xlane.xlu0 %341  ;;  %v345_v16 = vpop.xlane.xlu1 %344 }
  0xb1   : > { %2337 = vrsqrt.f32 %v391_v13  ;;  %v377_v18 = vmul.f32 0.015625, %v342_v15  ;;  %v378_v19 = vmul.f32 0.015625, %v345_v16 }
  0xb2   : > { %2339 = vrsqrt.f32 %v392_v14 }
  0xb3   : > { %v2330_v21 = vpop.eup %2329  ;;  %v393_v24 = vadd.f32 1e-06, %v377_v18  ;;  %v394_v25 = vadd.f32 1e-06, %v378_v19 }
  0xb4   : > { %v2332_v26 = vpop.eup %2331  ;;  %v419_v27 = vmul.f32 %v2330_v21, %v2539_v0  ;;  %v348_v30 = vpop.xlane.xlu0 %347  ;;  %v1194_v0 = vsub.s32 2, %v2634_v49 }
  0xb5   : > { %v351_v31 = vpop.xlane.xlu1 %350  ;;  %2341 = vrsqrt.f32 %v393_v24  ;;  %v2651_v32 = vmul.f32 %v2332_v26, %v2542_v1  ;;  %v379_v36 = vmul.f32 0.015625, %v348_v30 }
  0xb6   : > { %2343 = vrsqrt.f32 %v394_v25  ;;  %v2654_v33 = vmul.f32 %v2647_v20, %v419_v27  ;;  %v2657_v37 = vmul.f32 %v2643_v52, %v419_v27  ;;  %v380_v44 = vmul.f32 0.015625, %v351_v31 }
  0xb7   : > { %v2334_v38 = vpop.eup %2333  ;;  %v2661_v39 = vmul.f32 %v2647_v20, %v2651_v32  ;;  %v395_v54 = vadd.f32 1e-06, %v379_v36  ;;  %v2682_v56 = vrot.slane %v2639_v50, %v1194_v0 }
  0xb8   : > { %v2336_v42 = vpop.eup %2335  ;;  %v457_v43 = vand.u32 2147483647, %v2654_v33  ;;  %v2666_v1 = vmul.f32 %v2334_v38, %v2545_v2  ;;  %v354_v45 = vpop.xlane.xlu0 %353  ;;  %v396_v60 = vadd.f32 1e-06, %v380_v44 }
  0xb9   : > { %v357_v46 = vpop.xlane.xlu1 %356  ;;  %v459_v47 = vand.u32 2147483647, %v2661_v39  ;;  %v2670_v48 = vmul.f32 %v2336_v42, %v2554_v6  ;;  %v381_v51 = vmul.f32 0.015625, %v354_v45  ;;  %2345 = vrsqrt.f32 %v395_v54 }
  0xba   : > { %v473_v53 = vsel %vm321_vm0, %v457_v43, -inf  ;;  %v2675_v49 = vmul.f32 %v2647_v20, %v2666_v1  ;;  %v382_v4 = vmul.f32 0.015625, %v357_v46  ;;  %2347 = vrsqrt.f32 %v396_v60 }
  0xbb   : > { %v2338_v55 = vpop.eup %2337  ;;  %474 = vmax.xlane.f32.xlu0 %v473_v53  ;;  %v2679_v2 = vmul.f32 %v2647_v20, %v2670_v48  ;;  %v479_v6 = vsel %vm321_vm0, %v459_v47, -inf  ;;  %v397_v3 = vadd.f32 1e-06, %v381_v51  ;;  %v2729_v43 = vmul.f32 %v2682_v56, %v2651_v32 }
  0xbc   : > { %v2340_v57 = vpop.eup %2339  ;;  %v458_v58 = vand.u32 2147483647, %v2675_v49  ;;  %v2687_v59 = vmul.f32 %v2338_v55, %v2559_v8  ;;  %v360_v61 = vpop.xlane.xlu0 %359  ;;  %v398_v24 = vadd.f32 1e-06, %v382_v4  ;;  %v2734_v45 = vmul.f32 %v2682_v56, %v2666_v1 }
  0xbd   : > { %v460_v62 = vand.u32 2147483647, %v2679_v2  ;;  %v2691_v63 = vmul.f32 %v2340_v57, %v2562_v9  ;;  %v383_v7 = vmul.f32 0.015625, %v360_v61  ;;  %v363_v10 = vpop.xlane.xlu1 %362  ;;  %v2703_v9 = vmul.f32 %v2682_v56, %v419_v27 }
  0xbe   : > { %v476_v50 = vsel %vm321_vm0, %v458_v58, -inf  ;;  %v2696_v5 = vmul.f32 %v2647_v20, %v2687_v59  ;;  %2349 = vrsqrt.f32 %v397_v3  ;;  %v384_v30 = vmul.f32 0.015625, %v363_v10 }
  0xbf   : > { %v2342_v8 = vpop.eup %2341  ;;  %480 = vmax.xlane.f32.xlu0 %v479_v6  ;;  %477 = vmax.xlane.f32.xlu1 %v476_v50  ;;  %v2700_v11 = vmul.f32 %v2647_v20, %v2691_v63  ;;  %v482_v14 = vsel %vm321_vm0, %v460_v62, -inf  ;;  %v399_v27 = vadd.f32 1e-06, %v383_v7  ;;  %v1212_v42 = vand.u32 2147483647, %v2703_v9 }
  0xc0   : > { %v2344_v13 = vpop.eup %2343  ;;  %v461_v15 = vand.u32 2147483647, %v2696_v5  ;;  %v2708_v16 = vmul.f32 %v2342_v8, %v2567_v12  ;;  %v366_v18 = vpop.xlane.xlu0 %365  ;;  %2351 = vrsqrt.f32 %v398_v24  ;;  %v400_v46 = vadd.f32 1e-06, %v384_v30 }
  0xc1   : > { %v462_v19 = vand.u32 2147483647, %v2700_v11  ;;  %v2712_v21 = vmul.f32 %v2344_v13, %v2576_v17  ;;  %v385_v31 = vmul.f32 0.015625, %v366_v18  ;;  %v369_v38 = vpop.xlane.xlu1 %368  ;;  %2353 = vrsqrt.f32 %v399_v27 }
  0xc2   : > { %v485_v25 = vsel %vm321_vm0, %v461_v15, -inf  ;;  %v2717_v26 = vmul.f32 %v2647_v20, %v2708_v16  ;;  %v386_v51 = vmul.f32 0.015625, %v369_v38  ;;  %v1214_v55 = vand.u32 2147483647, %v2729_v43 }
  0xc3   : > { %483 = vmax.xlane.f32.xlu1 %v482_v14  ;;  %486 = vmax.xlane.f32.xlu0 %v485_v25  ;;  %v2721_v12 = vmul.f32 %v2647_v20, %v2712_v21  ;;  %v488_v36 = vsel %vm321_vm0, %v462_v19, -inf  ;;  %v401_v47 = vadd.f32 1e-06, %v385_v31  ;;  %v2346_v53 = vpop.eup %2345  ;;  %v2740_v57 = vmul.f32 %v2682_v56, %v2670_v48 }
  0xc4   : > { %v463_v17 = vand.u32 2147483647, %v2717_v26  ;;  %v2348_v6 = vpop.eup %2347  ;;  %v1228_v58 = vsel %vm321_vm0, %v1212_v42, -inf  ;;  %v1213_v60 = vand.u32 2147483647, %v2734_v45  ;;  %2355 = vrsqrt.f32 %v400_v46 }
  0xc5   : > { %v464_v0 = vand.u32 2147483647, %v2721_v12  ;;  %v2746_v61 = vmul.f32 %v2682_v56, %v2687_v59  ;;  %2357 = vrsqrt.f32 %v401_v47  ;;  %v402_v3 = vadd.f32 1e-06, %v386_v51 }
  0xc6   : > { %v491_v44 = vsel %vm321_vm0, %v463_v17, -inf  ;;  %v2749_v4 = vmul.f32 %v2346_v53, %v2585_v22  ;;  %v1234_v50 = vsel %vm321_vm0, %v1214_v55, -inf  ;;  %v1215_v7 = vand.u32 2147483647, %v2740_v57 }
  0xc7   : > { %489 = vmax.xlane.f32.xlu1 %v488_v36  ;;  %492 = vmax.xlane.f32.xlu0 %v491_v44  ;;  %v494_v54 = vsel %vm321_vm0, %v464_v0, -inf  ;;  %v2755_v10 = vmul.f32 %v2682_v56, %v2691_v63  ;;  %v1231_v8 = vsel %vm321_vm0, %v1213_v60, -inf  ;;  %v1216_v13 = vand.u32 2147483647, %v2746_v61 }
  0xc8   : > { %v2350_v62 = vpop.eup %2349  ;;  %v2761_v14 = vmul.f32 %v2682_v56, %v2708_v16  ;;  %v2764_v15 = vmul.f32 %v2348_v6, %v2588_v23  ;;  %2359 = vrsqrt.f32 %v402_v3  ;;  %v2768_v18 = vmul.f32 %v2682_v56, %v2749_v4 }
  0xc9   : > { %v2771_v19 = vmul.f32 %v2350_v62, %v2597_v28  ;;  %v1237_v25 = vsel %vm321_vm0, %v1215_v7, -inf  ;;  %v1217_v27 = vand.u32 2147483647, %v2755_v10  ;;  %v2777_v23 = vmul.f32 %v2682_v56, %v2712_v21 }
  0xca   : > { %v2352_v22 = vpop.eup %2351  ;;  %v1240_v30 = vsel %vm321_vm0, %v1216_v13, -inf  ;;  %v1218_v31 = vand.u32 2147483647, %v2761_v14  ;;  %v2783_v36 = vmul.f32 %v2682_v56, %v2764_v15  ;;  %v2787_v28 = vmul.f32 %v2643_v52, %v2666_v1 }
  0xcb   : > { %495 = vmax.xlane.f32.xlu1 %v494_v54  ;;  %1229 = vmax.xlane.f32.xlu0 %v1228_v58  ;;  %v2354_v24 = vpop.eup %2353  ;;  %v1220_v17 = vand.u32 2147483647, %v2768_v18  ;;  %v2792_v38 = vmul.f32 %v2682_v56, %v2771_v19  ;;  %v2795_v0 = vmul.f32 %v2352_v22, %v2600_v29  ;;  %v2802_v1 = vmul.f32 %v2643_v52, %v2651_v32 }
  0xcc   : > { %v2798_v42 = vmul.f32 %v2354_v24, %v2609_v34  ;;  %v1243_v47 = vsel %vm321_vm0, %v1217_v27, -inf  ;;  %v1246_v51 = vsel %vm321_vm0, %v1218_v31, -inf  ;;  %v1219_v53 = vand.u32 2147483647, %v2777_v23 }
  0xcd   : > { %v1221_v54 = vand.u32 2147483647, %v2783_v36  ;;  %v1252_v29 = vsel %vm321_vm0, %v1220_v17, -inf  ;;  %v1222_v34 = vand.u32 2147483647, %v2792_v38  ;;  %v2812_v55 = vmul.f32 %v2682_v56, %v2795_v0 }
  0xce   : > { %v2356_v44 = vpop.eup %2355  ;;  %v2816_v32 = vmul.f32 %v2682_v56, %v2798_v42  ;;  %v2826_v60 = vmul.f32 %v2643_v52, %v2670_v48  ;;  %v2830_v62 = vmul.f32 %v2643_v52, %v2687_v59  ;;  %v2870_v31 = vmul.f32 %v2647_v20, %v2749_v4 }
  0xcf   : > { %1232 = vmax.xlane.f32.xlu1 %v1231_v8  ;;  %1235 = vmax.xlane.f32.xlu0 %v1234_v50  ;;  %v2358_v46 = vpop.eup %2357  ;;  %v2819_v6 = vmul.f32 %v2356_v44, %v2612_v35  ;;  %v2834_v50 = vmul.f32 %v2643_v52, %v2691_v63  ;;  %v2838_v35 = vmul.f32 %v2643_v52, %v2708_v16  ;;  %v1255_v48 = vsel %vm321_vm0, %v1221_v54, -inf }
  0xd0   : > { %v2822_v58 = vmul.f32 %v2358_v46, %v2621_v40  ;;  %v1249_v40 = vsel %vm321_vm0, %v1219_v53, -inf  ;;  %v1258_v7 = vsel %vm321_vm0, %v1222_v34, -inf  ;;  %v1223_v59 = vand.u32 2147483647, %v2812_v55 }
  0xd1   : > { %v2846_v8 = vmul.f32 %v2643_v52, %v2712_v21  ;;  %v1224_v63 = vand.u32 2147483647, %v2816_v32  ;;  %v2851_v16 = vmul.f32 %v2682_v56, %v2819_v6  ;;  %v2877_v46 = vmul.f32 %v2647_v20, %v2764_v15 }
  0xd2   : > { %v2360_v3 = vpop.eup %2359  ;;  %v2855_v13 = vmul.f32 %v2682_v56, %v2822_v58  ;;  %v1261_v24 = vsel %vm321_vm0, %v1223_v59, -inf }
  0xd3   : > { %1238 = vmax.xlane.f32.xlu1 %v1237_v25  ;;  %1241 = vmax.xlane.f32.xlu0 %v1240_v30  ;;  %v2858_v22 = vmul.f32 %v2360_v3, %v2624_v41  ;;  %v1264_v21 = vsel %vm321_vm0, %v1224_v63, -inf  ;;  %v1225_v25 = vand.u32 2147483647, %v2851_v16  ;;  %v466_v54 = vand.u32 2147483647, %v2877_v46 }
  0xd4   : > { %v1226_v27 = vand.u32 2147483647, %v2855_v13 }
  0xd5   : > { %v2866_v30 = vmul.f32 %v2682_v56, %v2858_v22  ;;  %v1267_v41 = vsel %vm321_vm0, %v1225_v25, -inf  ;;  %v2882_v56 = vmul.f32 %v2647_v20, %v2771_v19  ;;  %v2912_v25 = vmul.f32 %v2647_v20, %v2822_v58 }
  0xd6   : > { %v1270_v17 = vsel %vm321_vm0, %v1226_v27, -inf  ;;  %v2319_v27 = vld [vmem:[%s3635_s3 + $0x10] sm:$0xff]  }
  0xd7   : > { %1244 = vmax.xlane.f32.xlu1 %v1243_v47  ;;  %1247 = vmax.xlane.f32.xlu0 %v1246_v51  ;;  %v1227_v44 = vand.u32 2147483647, %v2866_v30  ;;  %v465_v47 = vand.u32 2147483647, %v2870_v31  ;;  %v2317_v51 = vld [vmem:[%s3635_s3] sm:$0xff]  }
  0xd8   : > { %2118 = vmatprep.subr.bf16.mxu0 %v2317_v51  ;;  %2190 = vmatprep.subr.bf16.mxu1 %v2317_v51  ;;  %v467_v3 = vand.u32 2147483647, %v2882_v56 }
  0xd9   : > { %v1273_v53 = vsel %vm321_vm0, %v1227_v44, -inf  ;;  %v497_v34 = vsel %vm321_vm0, %v465_v47, -inf  ;;  %2119 = vmatpush3.bf16.msra.mxu0 %v2317_v51  ;;  %2194 = vmatpush3.bf16.msra.mxu1 %v2317_v51  ;;  %v471_v47 = vand.u32 2147483647, %v2912_v25  ;;  %v2923_v51 = vmul.f32 %v2647_v20, %v2858_v22 }
  0xda   : > { %v503_v63 = vsel %vm321_vm0, %v467_v3, -inf }
  0xdb   : > { %1250 = vmax.xlane.f32.xlu1 %v1249_v40  ;;  %1253 = vmax.xlane.f32.xlu0 %v1252_v29  ;;  %v2891_v29 = vmul.f32 %v2647_v20, %v2795_v0  ;;  %v2897_v40 = vmul.f32 %v2647_v20, %v2798_v42  ;;  %v472_v3 = vand.u32 2147483647, %v2923_v51 }
  0xdd   : > { %v468_v59 = vand.u32 2147483647, %v2891_v29 }
  0xdf   : > { %1256 = vmax.xlane.f32.xlu1 %v1255_v48  ;;  %1259 = vmax.xlane.f32.xlu0 %v1258_v7  ;;  %v2318_v48 = vld [vmem:[%s3635_s3 + $0x8] sm:$0xff]   ;;  %v500_v7 = vsel %vm321_vm0, %v466_v54, -inf }
  0xe0   : > { %2120 = vmatprep.subr.bf16.mxu0 %v2318_v48  ;;  %2191 = vmatprep.subr.bf16.mxu1 %v2318_v48 }
  0xe1   : > { %2121 = vmatpush3.bf16.msra.mxu0 %v2318_v48  ;;  %2195 = vmatpush3.bf16.msra.mxu1 %v2318_v48  ;;  %v834_v48 = vand.u32 2147483647, %v2657_v37 }
  0xe2   : > { %2122 = vmatprep.subr.bf16.mxu0 %v2319_v27  ;;  %2192 = vmatprep.subr.bf16.mxu1 %v2319_v27 }
  0xe3   : > { %1262 = vmax.xlane.f32.xlu1 %v1261_v24  ;;  %1265 = vmax.xlane.f32.xlu0 %v1264_v21  ;;  %v469_v24 = vand.u32 2147483647, %v2897_v40  ;;  %v2908_v21 = vmul.f32 %v2647_v20, %v2819_v6  ;;  %v2935_v20 = vld [vmem:[%s3635_s3 + $0x40] sm:$0xff]  }
  0xe5   : > { %v470_v44 = vand.u32 2147483647, %v2908_v21  ;;  %2123 = vmatpush3.bf16.msra.mxu0 %v2319_v27  ;;  %2196 = vmatpush3.bf16.msra.mxu1 %v2319_v27 }
  0xe7   : > { %1268 = vmax.xlane.f32.xlu1 %v1267_v41  ;;  %1271 = vmax.xlane.f32.xlu0 %v1270_v17  ;;  %v506_v41 = vsel %vm321_vm0, %v468_v59, -inf  ;;  %v509_v17 = vsel %vm321_vm0, %v469_v24, -inf  ;;  %v512_v54 = vsel %vm321_vm0, %v470_v44, -inf  ;;  %v850_v59 = vsel %vm321_vm0, %v834_v48, -inf }
  0xe8   : > { %v836_v24 = vand.u32 2147483647, %v2802_v1  ;;  %v838_v44 = vand.u32 2147483647, %v2830_v62  ;;  %v2956_v48 = vmul.f32 %v2643_v52, %v2764_v15 }
  0xeb   : > { %1274 = vmax.xlane.f32.xlu1 %v1273_v53  ;;  %498 = vmax.xlane.f32.xlu0 %v497_v34  ;;  %v2320_v53 = vld [vmem:[%s3635_s3 + $0x18] sm:$0xff]   ;;  %v515_v34 = vsel %vm321_vm0, %v471_v47, -inf  ;;  %v839_v47 = vand.u32 2147483647, %v2834_v50 }
  0xec   : > { %2124 = vmatprep.subr.bf16.mxu0 %v2320_v53  ;;  %2193 = vmatprep.subr.bf16.mxu1 %v2320_v53 }
  0xed   : > { %2125 = vmatpush3.bf16.msra.mxu0 %v2320_v53  ;;  %2197 = vmatpush3.bf16.msra.mxu1 %v2320_v53 }
  0xee   : > { %2166 = vmatprep.subr.bf16.mxu0 %v2935_v20 }
  0xef   : > { %501 = vmax.xlane.f32.xlu1 %v500_v7  ;;  %504 = vmax.xlane.f32.xlu0 %v503_v63  ;;  %v518_v7 = vsel %vm321_vm0, %v472_v3, -inf  ;;  %v835_v63 = vand.u32 2147483647, %v2787_v28  ;;  %v2952_v3 = vmul.f32 %v2643_v52, %v2749_v4  ;;  %v843_v4 = vand.u32 2147483647, %v2956_v48 }
  0xf1   : > { %v853_v27 = vsel %vm321_vm0, %v835_v63, -inf }
  0xf3   : > { %507 = vmax.xlane.f32.xlu1 %v506_v41  ;;  %510 = vmax.xlane.f32.xlu0 %v509_v17  ;;  %v856_v41 = vsel %vm321_vm0, %v836_v24, -inf  ;;  %v837_v17 = vand.u32 2147483647, %v2826_v60  ;;  %v841_v24 = vand.u32 2147483647, %v2846_v8 }
  0xf5   : > { %v859_v53 = vsel %vm321_vm0, %v837_v17, -inf  ;;  %v871_v15 = vsel %vm321_vm0, %v841_v24, -inf }
  0xf7   : > { %513 = vmax.xlane.f32.xlu1 %v512_v54  ;;  %516 = vmax.xlane.f32.xlu0 %v515_v34  ;;  %v862_v54 = vsel %vm321_vm0, %v838_v44, -inf  ;;  %v840_v34 = vand.u32 2147483647, %v2838_v35  ;;  %v2976_v44 = vmul.f32 %v2643_v52, %v2798_v42 }
  0xf9   : > { %v868_v63 = vsel %vm321_vm0, %v840_v34, -inf }
  0xfb   : > { %519 = vmax.xlane.f32.xlu1 %v518_v7  ;;  %851 = vmax.xlane.f32.xlu0 %v850_v59  ;;  %v2960_v7 = vmul.f32 %v2643_v52, %v2771_v19  ;;  %v865_v59 = vsel %vm321_vm0, %v839_v47, -inf  ;;  %v2972_v19 = vmul.f32 %v2643_v52, %v2795_v0  ;;  %v2980_v47 = vmul.f32 %v2643_v52, %v2819_v6 }
  0xfd   : > { %3697 = vst [vmem:[#allocation2_spill] sm:$0xff] %v2980_v47  ;;  %v845_v0 = vand.u32 2147483647, %v2972_v19  ;;  %v847_v42 = vand.u32 2147483647, %v2980_v47 }
  0xff   : > { %854 = vmax.xlane.f32.xlu1 %v853_v27  ;;  %857 = vmax.xlane.f32.xlu0 %v856_v41  ;;  %v842_v27 = vand.u32 2147483647, %v2952_v3  ;;  %v844_v41 = vand.u32 2147483647, %v2960_v7 }
 0x101   : > { %v874_v17 = vsel %vm321_vm0, %v842_v27, -inf  ;;  %v880_v34 = vsel %vm321_vm0, %v844_v41, -inf  ;;  %v889_v27 = vsel %vm321_vm0, %v847_v42, -inf }
 0x103   : > { %860 = vmax.xlane.f32.xlu1 %v859_v53  ;;  %863 = vmax.xlane.f32.xlu0 %v862_v54  ;;  %v2984_v53 = vmul.f32 %v2643_v52, %v2822_v58  ;;  %v877_v54 = vsel %vm321_vm0, %v843_v4, -inf  ;;  %v2996_v58 = vmul.f32 %v2643_v52, %v2858_v22  ;;  %v436_v52 = vld [vmem:[%s3634_s2] sm:$0x7] }
 0x104   : > { %2214 = vpush %v436_v52  ;;  %v1172_v22 = vrot.slane %v436_v52, 1 }
 0x105   : > { %3698 = vst [vmem:[#allocation3_spill] sm:$0xff] %v2984_v53  ;;  %v848_v24 = vand.u32 2147483647, %v2984_v53  ;;  %3699 = vst [vmem:[#allocation4_spill] sm:$0xff] %v2996_v58  ;;  %v849_v41 = vand.u32 2147483647, %v2996_v58 }
 0x106   : > { %2232 = vpush %v1172_v22 }
 0x107   : > { %866 = vmax.xlane.f32.xlu1 %v865_v59  ;;  %869 = vmax.xlane.f32.xlu0 %v868_v63  ;;  %v846_v59 = vand.u32 2147483647, %v2976_v44  ;;  %v883_v63 = vsel %vm321_vm0, %v845_v0, -inf  ;;  %v892_v4 = vsel %vm321_vm0, %v848_v24, -inf }
 0x109   : > { %v886_v6 = vsel %vm321_vm0, %v846_v59, -inf }
 0x10b   : > { %872 = vmax.xlane.f32.xlu1 %v871_v15  ;;  %875 = vmax.xlane.f32.xlu0 %v874_v17  ;;  %v895_v15 = vsel %vm321_vm0, %v849_v41, -inf  ;;  %v3005_v17 = vld [vmem:[%s3635_s3 + $0x20] sm:$0xff]  }
 0x10c   : > { %2142 = vmatprep.subr.bf16.mxu1 %v3005_v17 }
 0x10f   : > { %878 = vmax.xlane.f32.xlu1 %v877_v54  ;;  %881 = vmax.xlane.f32.xlu0 %v880_v34  ;;  %v1550_v54 = vrot.slane %v436_v52, 2 }
 0x111   : > { %2250 = vpush %v1550_v54 }
 0x113   : > { %884 = vmax.xlane.f32.xlu1 %v883_v63  ;;  %887 = vmax.xlane.f32.xlu0 %v886_v6 }
 0x117   : > { %890 = vmax.xlane.f32.xlu1 %v889_v27  ;;  %893 = vmax.xlane.f32.xlu0 %v892_v4 }
 0x11b   : > { %896 = vmax.xlane.f32.xlu1 %v895_v15 }
 0x135   : > { %s2215_s8 = spop %2214 }
 0x137   : > { %s3384_s13 = spop %2232 }
 0x142   : > { %s2251_s14 = spop %2250 }
 0x148   : > { %v3011_v34 = vpop.xlane.xlu0 %474 }
 0x149   : > { %3700 = vst [vmem:[#allocation5_spill] sm:$0xff] %v3011_v34  ;;  %v3639_v0 = vmax.f32 %v3011_v34, 1e-05 }
 0x14b   : > { %2361 = vrcp.f32 %v3639_v0 }
 0x14c   : > { %v3016_v59 = vpop.xlane.xlu1 %477  ;;  %v3018_v42 = vpop.xlane.xlu0 %480 }
 0x14d   : > { %3701 = vst [vmem:[#allocation6_spill] sm:$0xff] %v3016_v59  ;;  %3702 = vst [vmem:[#allocation7_spill] sm:$0xff] %v3018_v42  ;;  %v3638_v63 = vmax.f32 %v3016_v59, 1e-05  ;;  %v3641_v6 = vmax.f32 %v3018_v42, 1e-05 }
 0x14f   : > { %2363 = vrcp.f32 %v3638_v63 }
 0x150   : > { %2365 = vrcp.f32 %v3641_v6  ;;  %v3026_v24 = vpop.xlane.xlu1 %483  ;;  %v3028_v27 = vpop.xlane.xlu0 %486 }
 0x151   : > { %3703 = vst [vmem:[#allocation8_spill] sm:$0xff] %v3026_v24  ;;  %3704 = vst [vmem:[#allocation9_spill] sm:$0xff] %v3028_v27  ;;  %v3640_v4 = vmax.f32 %v3026_v24, 1e-05  ;;  %v3642_v41 = vmax.f32 %v3028_v27, 1e-05 }
 0x153   : > { %2367 = vrcp.f32 %v3640_v4 }
 0x154   : > { %2369 = vrcp.f32 %v3642_v41  ;;  %v3036_v15 = vpop.xlane.xlu1 %489  ;;  %v3038_v52 = vpop.xlane.xlu0 %492 }
 0x155   : > { %3705 = vst [vmem:[#allocation10_spill] sm:$0xff] %v3036_v15  ;;  %3706 = vst [vmem:[#allocation11_spill] sm:$0xff] %v3038_v52  ;;  %v2362_v22 = vpop.eup %2361  ;;  %v3648_v54 = vmax.f32 %v3036_v15, 1e-05  ;;  %v3649_v63 = vmax.f32 %v3038_v52, 1e-05 }
 0x156   : > { %v538_v0 = vmul.f32 127.0, %v2362_v22 }
 0x157   : > { %2371 = vrcp.f32 %v3648_v54 }
 0x158   : > { %2373 = vrcp.f32 %v3649_v63  ;;  %v3046_v4 = vpop.xlane.xlu1 %495  ;;  %v3048_v6 = vpop.xlane.xlu0 %1229  ;;  %v569_v42 = vmul.f32 %v538_v0, %v2654_v33 }
 0x159   : > { %3707 = vst [vmem:[#allocation12_spill] sm:$0xff] %v3046_v4  ;;  %3708 = vst [vmem:[#allocation13_spill] sm:$0xff] %v3048_v6  ;;  %v2364_v41 = vpop.eup %2363  ;;  %v3654_v27 = vmax.f32 %v3046_v4, 1e-05  ;;  %v3656_v59 = vmax.f32 %v3048_v6, 1e-05 }
 0x15a   : > { %v2366_v24 = vpop.eup %2365  ;;  %v540_v34 = vmul.f32 127.0, %v2364_v41 }
 0x15b   : > { %v542_v22 = vmul.f32 127.0, %v2366_v24  ;;  %2375 = vrcp.f32 %v3654_v27  ;;  %v2198_v24 = vround.rtne.f32 %v569_v42 }
 0x15c   : > { %2377 = vrcp.f32 %v3656_v59  ;;  %v3057_v54 = vpop.xlane.xlu1 %1232  ;;  %v3059_v63 = vpop.xlane.xlu0 %1235  ;;  %v570_v15 = vmul.f32 %v540_v34, %v2675_v49 }
 0x15d   : > { %v2368_v52 = vpop.eup %2367  ;;  %v3659_v58 = vmax.f32 %v3057_v54, 1e-05  ;;  %v3664_v41 = vmax.f32 %v3059_v63, 1e-05  ;;  %v571_v33 = vmul.f32 %v542_v22, %v2661_v39 }
 0x15e   : > { %v2370_v53 = vpop.eup %2369  ;;  %v544_v0 = vmul.f32 127.0, %v2368_v52  ;;  %v2199_v27 = vround.rtne.f32 %v570_v15 }
 0x15f   : > { %v546_v4 = vmul.f32 127.0, %v2370_v53  ;;  %2379 = vrcp.f32 %v3659_v58  ;;  %v2200_v53 = vround.rtne.f32 %v571_v33 }
 0x160   : > { %v572_v59 = vmul.f32 %v544_v0, %v2679_v2  ;;  %2381 = vrcp.f32 %v3664_v41  ;;  %v3070_v49 = vpop.xlane.xlu1 %1238  ;;  %v3072_v34 = vpop.xlane.xlu0 %1241  ;;  %v601_v6 = vpack.c.bf16 %v2199_v27, %v2198_v24 }
 0x161   : > { %v2372_v47 = vpop.eup %2371  ;;  %v3661_v39 = vmax.f32 %v3070_v49, 1e-05  ;;  %v3660_v42 = vmax.f32 %v3072_v34, 1e-05  ;;  %v573_v22 = vmul.f32 %v546_v4, %v2696_v5  ;;  %v2322_v5 = vld [vmem:[%s3635_s3 + $0x48] sm:$0xff]  }
 0x162   : > { %v2374_v15 = vpop.eup %2373  ;;  %v2201_v52 = vround.rtne.f32 %v572_v59  ;;  %v548_v58 = vmul.f32 127.0, %v2372_v47  ;;  %2126 = vmatprep.mubr.msk.bf16.mxu0 %vm321_vm0, %v601_v6 }
 0x163   : > { %v550_v2 = vmul.f32 127.0, %v2374_v15  ;;  %2383 = vrcp.f32 %v3661_v39  ;;  %v2202_v15 = vround.rtne.f32 %v573_v22 }
 0x164   : > { %v574_v0 = vmul.f32 %v548_v58, %v2700_v11  ;;  %2385 = vrcp.f32 %v3660_v42  ;;  %v3083_v27 = vpop.xlane.xlu1 %1244  ;;  %v3085_v24 = vpop.xlane.xlu0 %1247  ;;  %v602_v33 = vpack.c.bf16 %v2201_v52, %v2200_v53 }
 0x165   : > { %v2376_v47 = vpop.eup %2375  ;;  %v3662_v59 = vmax.f32 %v3083_v27, 1e-05  ;;  %v3663_v6 = vmax.f32 %v3085_v24, 1e-05  ;;  %v575_v58 = vmul.f32 %v550_v2, %v2717_v26  ;;  %v2323_v2 = vld [vmem:[%s3635_s3 + $0x50] sm:$0xff]  }
 0x166   : > { %v2378_v4 = vpop.eup %2377  ;;  %v2203_v11 = vround.rtne.f32 %v574_v0  ;;  %v552_v42 = vmul.f32 127.0, %v2376_v47  ;;  %2127 = vmatmul.mubr.msk.bf16.vlgmr.msra.gmra.mrb[0].mxu0 %vm321_vm0, %v602_v33 }
 0x167   : > { %v1293_v39 = vmul.f32 127.0, %v2378_v4  ;;  %2387 = vrcp.f32 %v3662_v59  ;;  %2167 = vmatpush3.bf16.msra.mxu0 %v2935_v20 }
 0x168   : > { %v576_v53 = vmul.f32 %v552_v42, %v2721_v12  ;;  %2389 = vrcp.f32 %v3663_v6  ;;  %v3100_v52 = vpop.xlane.xlu1 %1250  ;;  %v3102_v22 = vpop.xlane.xlu0 %1253  ;;  %2168 = vmatprep.subr.bf16.mxu0 %v2322_v5  ;;  %v603_v26 = vpack.c.bf16 %v2203_v11, %v2202_v15  ;;  %v2204_v12 = vround.rtne.f32 %v575_v58 }
 0x169   : > { %v2380_v0 = vpop.eup %2379  ;;  %v3666_v33 = vmax.f32 %v3100_v52, 1e-05  ;;  %v3665_v20 = vmax.f32 %v3102_v22, 1e-05  ;;  %v1324_v4 = vmul.f32 %v1293_v39, %v2703_v9  ;;  %v2324_v9 = vld [vmem:[%s3635_s3 + $0x58] sm:$0xff]  }
 0x16a   : > { %v2382_v47 = vpop.eup %2381  ;;  %v2205_v42 = vround.rtne.f32 %v576_v53  ;;  %v1295_v59 = vmul.f32 127.0, %v2380_v0  ;;  %2130 = vmatprep.mubr.msk.bf16.mxu0 %vm321_vm0, %v603_v26 }
 0x16b   : > { %v1297_v6 = vmul.f32 127.0, %v2382_v47  ;;  %2391 = vrcp.f32 %v3666_v33  ;;  %2169 = vmatpush3.bf16.msra.mxu0 %v2322_v5 }
 0x16c   : > { %v1325_v15 = vmul.f32 %v1295_v59, %v2734_v45  ;;  %2393 = vrcp.f32 %v3665_v20  ;;  %v3116_v11 = vpop.xlane.xlu1 %1256  ;;  %v3118_v41 = vpop.xlane.xlu0 %1259  ;;  %2170 = vmatprep.subr.bf16.mxu0 %v2323_v2  ;;  %v604_v58 = vpack.c.bf16 %v2205_v42, %v2204_v12  ;;  %v2234_v45 = vround.rtne.f32 %v1324_v4 }
 0x16d   : > { %v2384_v39 = vpop.eup %2383  ;;  %v3667_v53 = vmax.f32 %v3116_v11, 1e-05  ;;  %v1286_v5 = vmax.f32 %v3118_v41, 1e-05  ;;  %v1326_v0 = vmul.f32 %v1297_v6, %v2729_v43 }
 0x16e   : > { %v2386_v26 = vpop.eup %2385  ;;  %v2235_v59 = vround.rtne.f32 %v1325_v15  ;;  %v1299_v47 = vmul.f32 127.0, %v2384_v39  ;;  %2131 = vmatmul.mubr.msk.bf16.gmra.mrb[4].mxu0 %vm321_vm0, %v604_v58 }
 0x16f   : > { %v1301_v20 = vmul.f32 127.0, %v2386_v26  ;;  %2395 = vrcp.f32 %v3667_v53  ;;  %2171 = vmatpush3.bf16.msra.mxu0 %v2323_v2  ;;  %v2236_v39 = vround.rtne.f32 %v1326_v0 }
 0x170   : > { %v1327_v12 = vmul.f32 %v1299_v47, %v2740_v57  ;;  %2397 = vrcp.f32 %v1286_v5  ;;  %v3132_v42 = vpop.xlane.xlu1 %1262  ;;  %v3134_v33 = vpop.xlane.xlu0 %1265  ;;  %2172 = vmatprep.subr.bf16.mxu0 %v2324_v9  ;;  %v1356_v4 = vpack.c.bf16 %v2235_v59, %v2234_v45 }
 0x171   : > { %v2388_v43 = vpop.eup %2387  ;;  %v3670_v6 = vmax.f32 %v3132_v42, 1e-05  ;;  %v3668_v15 = vmax.f32 %v3134_v33, 1e-05  ;;  %v1328_v2 = vmul.f32 %v1301_v20, %v2746_v61 }
 0x172   : > { %v2390_v58 = vpop.eup %2389  ;;  %v2237_v26 = vround.rtne.f32 %v1327_v12  ;;  %v1303_v57 = vmul.f32 127.0, %v2388_v43  ;;  %2174 = vmatprep.mubr.msk.bf16.mxu0 %vm321_vm0, %v1356_v4 }
 0x173   : > { %v1305_v47 = vmul.f32 127.0, %v2390_v58  ;;  %2399 = vrcp.f32 %v3670_v6  ;;  %2173 = vmatpush3.bf16.msra.mxu0 %v2324_v9  ;;  %v2238_v43 = vround.rtne.f32 %v1328_v2 }
 0x174   : > { %v1357_v53 = vpack.c.bf16 %v2237_v26, %v2236_v39  ;;  %v1329_v45 = vmul.f32 %v1303_v57, %v2755_v10  ;;  %2401 = vrcp.f32 %v3668_v15  ;;  %v3145_v59 = vpop.xlane.xlu1 %1268  ;;  %v3147_v0 = vpop.xlane.xlu0 %1271 }
 0x175   : > { %v2392_v12 = vpop.eup %2391  ;;  %v3669_v61 = vmax.f32 %v3145_v59, 1e-05  ;;  %v3672_v20 = vmax.f32 %v3147_v0, 1e-05  ;;  %v1330_v9 = vmul.f32 %v1305_v47, %v2761_v14 }
 0x176   : > { %v2394_v4 = vpop.eup %2393  ;;  %v2239_v58 = vround.rtne.f32 %v1329_v45  ;;  %v1307_v39 = vmul.f32 127.0, %v2392_v12  ;;  %2175 = vmatmul.mubr.msk.bf16.vlgmr.msra.gmra.mrb[8].mxu0 %vm321_vm0, %v1357_v53 }
 0x177   : > { %v1309_v10 = vmul.f32 127.0, %v2394_v4  ;;  %2403 = vrcp.f32 %v3669_v61  ;;  %v2240_v12 = vround.rtne.f32 %v1330_v9 }
 0x178   : > { %v1331_v26 = vmul.f32 %v1307_v39, %v2777_v23  ;;  %2405 = vrcp.f32 %v3672_v20  ;;  %v3158_v57 = vpop.xlane.xlu1 %1274  ;;  %v3160_v15 = vpop.xlane.xlu0 %498  ;;  %v1358_v2 = vpack.c.bf16 %v2239_v58, %v2238_v43 }
 0x179   : > { %v2396_v45 = vpop.eup %2395  ;;  %v3671_v14 = vmax.f32 %v3158_v57, 1e-05  ;;  %v3674_v47 = vmax.f32 %v3160_v15, 1e-05  ;;  %v1332_v61 = vmul.f32 %v1309_v10, %v2768_v18 }
 0x17a   : > { %v2398_v53 = vpop.eup %2397  ;;  %v2241_v4 = vround.rtne.f32 %v1331_v26  ;;  %v1311_v6 = vmul.f32 127.0, %v2396_v45  ;;  %2178 = vmatprep.mubr.msk.bf16.mxu0 %vm321_vm0, %v1358_v2 }
 0x17b   : > { %v1313_v23 = vmul.f32 127.0, %v2398_v53  ;;  %2407 = vrcp.f32 %v3671_v14  ;;  %v2242_v45 = vround.rtne.f32 %v1332_v61 }
 0x17c   : > { %v1333_v39 = vmul.f32 %v1311_v6, %v2783_v36  ;;  %2409 = vrcp.f32 %v3674_v47  ;;  %v3171_v43 = vpop.xlane.xlu1 %501  ;;  %v3173_v58 = vpop.xlane.xlu0 %504  ;;  %v1359_v9 = vpack.c.bf16 %v2241_v4, %v2240_v12 }
 0x17d   : > { %v2400_v26 = vpop.eup %2399  ;;  %v3673_v18 = vmax.f32 %v3171_v43, 1e-05  ;;  %v3676_v10 = vmax.f32 %v3173_v58, 1e-05  ;;  %v1334_v14 = vmul.f32 %v1313_v23, %v2792_v38 }
 0x17e   : > { %v2402_v2 = vpop.eup %2401  ;;  %v2243_v53 = vround.rtne.f32 %v1333_v39  ;;  %v1315_v20 = vmul.f32 127.0, %v2400_v26  ;;  %2179 = vmatmul.mubr.msk.bf16.gmra.mrb[12].mxu0 %vm321_vm0, %v1359_v9 }
 0x17f   : > { %v1317_v36 = vmul.f32 127.0, %v2402_v2  ;;  %2411 = vrcp.f32 %v3673_v18  ;;  %v2244_v26 = vround.rtne.f32 %v1334_v14 }
 0x180   : > { %v1335_v6 = vmul.f32 %v1315_v20, %v2812_v55  ;;  %2413 = vrcp.f32 %v3676_v10  ;;  %v3184_v12 = vpop.xlane.xlu1 %507  ;;  %v3186_v4 = vpop.xlane.xlu0 %510  ;;  %v1360_v61 = vpack.c.bf16 %v2243_v53, %v2242_v45 }
 0x181   : > { %v2404_v39 = vpop.eup %2403  ;;  %v3675_v38 = vmax.f32 %v3184_v12, 1e-05  ;;  %v3677_v23 = vmax.f32 %v3186_v4, 1e-05  ;;  %v1336_v18 = vmul.f32 %v1317_v36, %v2816_v32 }
 0x182   : > { %v2406_v9 = vpop.eup %2405  ;;  %v2245_v2 = vround.rtne.f32 %v1335_v6  ;;  %v1319_v47 = vmul.f32 127.0, %v2404_v39  ;;  %2182 = vmatprep.mubr.msk.bf16.mxu0 %vm321_vm0, %v1360_v61 }
 0x183   : > { %v1321_v55 = vmul.f32 127.0, %v2406_v9  ;;  %2415 = vrcp.f32 %v3675_v38  ;;  %v2246_v39 = vround.rtne.f32 %v1336_v18 }
 0x184   : > { %v1337_v20 = vmul.f32 %v1319_v47, %v2851_v16  ;;  %2417 = vrcp.f32 %v3677_v23  ;;  %v3197_v45 = vpop.xlane.xlu1 %513  ;;  %v3199_v53 = vpop.xlane.xlu0 %516  ;;  %v1361_v14 = vpack.c.bf16 %v2245_v2, %v2244_v26 }
 0x185   : > { %v2408_v6 = vpop.eup %2407  ;;  %v3678_v32 = vmax.f32 %v3197_v45, 1e-05  ;;  %v3681_v36 = vmax.f32 %v3199_v53, 1e-05  ;;  %v1338_v38 = vmul.f32 %v1321_v55, %v2855_v13 }
 0x186   : > { %v2410_v61 = vpop.eup %2409  ;;  %v2247_v9 = vround.rtne.f32 %v1337_v20  ;;  %v1323_v10 = vmul.f32 127.0, %v2408_v6  ;;  %2183 = vmatmul.mubr.msk.bf16.gmra.mrb[16].mxu0 %vm321_vm0, %v1361_v14 }
 0x187   : > { %v554_v16 = vmul.f32 127.0, %v2410_v61  ;;  %2419 = vrcp.f32 %v3678_v32  ;;  %v2248_v6 = vround.rtne.f32 %v1338_v38 }
 0x188   : > { %v1339_v47 = vmul.f32 %v1323_v10, %v2866_v30  ;;  %2421 = vrcp.f32 %v3681_v36  ;;  %v3210_v26 = vpop.xlane.xlu1 %519  ;;  %v3212_v2 = vpop.xlane.xlu0 %851  ;;  %v1362_v18 = vpack.c.bf16 %v2247_v9, %v2246_v39 }
 0x189   : > { %v2412_v20 = vpop.eup %2411  ;;  %v3679_v13 = vmax.f32 %v3210_v26, 1e-05  ;;  %v3680_v55 = vmax.f32 %v3212_v2, 1e-05  ;;  %v577_v30 = vmul.f32 %v554_v16, %v2870_v31 }
 0x18a   : > { %v2414_v14 = vpop.eup %2413  ;;  %v2249_v61 = vround.rtne.f32 %v1339_v47  ;;  %v556_v23 = vmul.f32 127.0, %v2412_v20  ;;  %2186 = vmatprep.mubr.msk.bf16.mxu0 %vm321_vm0, %v1362_v18 }
 0x18b   : > { %v558_v10 = vmul.f32 127.0, %v2414_v14  ;;  %2423 = vrcp.f32 %v3679_v13  ;;  %v2206_v13 = vround.rtne.f32 %v577_v30 }
 0x18c   : > { %2425 = vrcp.f32 %v3680_v55  ;;  %v3222_v39 = vpop.xlane.xlu1 %854  ;;  %v3224_v9 = vpop.xlane.xlu0 %857  ;;  %v1363_v32 = vpack.c.bf16 %v2249_v61, %v2248_v6  ;;  %v578_v38 = vmul.f32 %v556_v23, %v2877_v46 }
 0x18d   : > { %v2416_v47 = vpop.eup %2415  ;;  %v3682_v20 = vmax.f32 %v3222_v39, 1e-05  ;;  %v3687_v18 = vmax.f32 %v3224_v9, 1e-05  ;;  %v579_v16 = vmul.f32 %v558_v10, %v2882_v56 }
 0x18e   : > { %v2418_v31 = vpop.eup %2417  ;;  %v560_v14 = vmul.f32 127.0, %v2416_v47  ;;  %2187 = vmatmul.mubr.msk.bf16.gmra.mrb[20].mxu0 %vm321_vm0, %v1363_v32  ;;  %v2207_v55 = vround.rtne.f32 %v578_v38 }
 0x18f   : > { %v562_v36 = vmul.f32 127.0, %v2418_v31  ;;  %2427 = vrcp.f32 %v3682_v20  ;;  %v2208_v38 = vround.rtne.f32 %v579_v16 }
 0x190   : > { %v580_v6 = vmul.f32 %v560_v14, %v2891_v29  ;;  %2429 = vrcp.f32 %v3687_v18  ;;  %v3236_v46 = vpop.xlane.xlu1 %860  ;;  %v3238_v23 = vpop.xlane.xlu0 %863  ;;  %v605_v61 = vpack.c.bf16 %v2207_v55, %v2206_v13 }
 0x191   : > { %v2420_v56 = vpop.eup %2419  ;;  %v3684_v10 = vmax.f32 %v3236_v46, 1e-05  ;;  %v3683_v32 = vmax.f32 %v3238_v23, 1e-05  ;;  %v581_v31 = vmul.f32 %v562_v36, %v2897_v40  ;;  %v2326_v40 = vld [vmem:[%s3635_s3 + $0x28] sm:$0xff]  }
 0x192   : > { %v2422_v30 = vpop.eup %2421  ;;  %v2209_v47 = vround.rtne.f32 %v580_v6  ;;  %v564_v20 = vmul.f32 127.0, %v2420_v56  ;;  %2134 = vmatprep.mubr.msk.bf16.mxu1 %vm321_vm0, %v605_v61 }
 0x193   : > { %v566_v29 = vmul.f32 127.0, %v2422_v30  ;;  %2431 = vrcp.f32 %v3684_v10  ;;  %v2210_v30 = vround.rtne.f32 %v581_v31 }
 0x194   : > { %v582_v14 = vmul.f32 %v564_v20, %v2908_v21  ;;  %2433 = vrcp.f32 %v3683_v32  ;;  %v3249_v13 = vpop.xlane.xlu1 %866  ;;  %v3251_v55 = vpop.xlane.xlu0 %869  ;;  %v606_v16 = vpack.c.bf16 %v2209_v47, %v2208_v38 }
 0x195   : > { %v2424_v36 = vpop.eup %2423  ;;  %v3685_v6 = vmax.f32 %v3249_v13, 1e-05  ;;  %v3686_v61 = vmax.f32 %v3251_v55, 1e-05  ;;  %v583_v20 = vmul.f32 %v566_v29, %v2912_v25  ;;  %v2327_v25 = vld [vmem:[%s3635_s3 + $0x30] sm:$0xff]  }
 0x196   : > { %v2426_v56 = vpop.eup %2425  ;;  %v2211_v21 = vround.rtne.f32 %v582_v14  ;;  %v568_v32 = vmul.f32 127.0, %v2424_v36  ;;  %2135 = vmatmul.mubr.msk.bf16.vlgmr.msra.gmra.mrb[0].mxu1 %vm321_vm0, %v606_v16 }
 0x197   : > { %v915_v10 = vmul.f32 127.0, %v2426_v56  ;;  %2435 = vrcp.f32 %v3685_v6  ;;  %2143 = vmatpush3.bf16.msra.mxu1 %v3005_v17 }
 0x198   : > { %v584_v38 = vmul.f32 %v568_v32, %v2923_v51  ;;  %2437 = vrcp.f32 %v3686_v61  ;;  %v3266_v47 = vpop.xlane.xlu1 %872  ;;  %v3268_v31 = vpop.xlane.xlu0 %875  ;;  %v607_v14 = vpack.c.bf16 %v2211_v21, %v2210_v30  ;;  %2144 = vmatprep.subr.bf16.mxu1 %v2326_v40  ;;  %v2212_v51 = vround.rtne.f32 %v583_v20 }
 0x199   : > { %v2428_v29 = vpop.eup %2427  ;;  %v3689_v16 = vmax.f32 %v3266_v47, 1e-05  ;;  %v3688_v17 = vmax.f32 %v3268_v31, 1e-05  ;;  %v946_v56 = vmul.f32 %v915_v10, %v2657_v37  ;;  %v2328_v37 = vld [vmem:[%s3635_s3 + $0x38] sm:$0xff]  }
 0x19a   : > { %v2430_v36 = vpop.eup %2429  ;;  %v2213_v32 = vround.rtne.f32 %v584_v38  ;;  %v917_v6 = vmul.f32 127.0, %v2428_v29  ;;  %2138 = vmatprep.mubr.msk.bf16.mxu1 %vm321_vm0, %v607_v14 }
 0x19b   : > { %v919_v61 = vmul.f32 127.0, %v2430_v36  ;;  %2439 = vrcp.f32 %v3689_v16  ;;  %2145 = vmatpush3.bf16.msra.mxu1 %v2326_v40 }
 0x19c   : > { %v947_v30 = vmul.f32 %v917_v6, %v2787_v28  ;;  %2441 = vrcp.f32 %v3688_v17  ;;  %v3282_v21 = vpop.xlane.xlu1 %878  ;;  %v3284_v18 = vpop.xlane.xlu0 %881  ;;  %v608_v20 = vpack.c.bf16 %v2213_v32, %v2212_v51  ;;  %2146 = vmatprep.subr.bf16.mxu1 %v2327_v25  ;;  %v2216_v28 = vround.rtne.f32 %v946_v56 }
 0x19d   : > { %v2432_v10 = vpop.eup %2431  ;;  %v3690_v38 = vmax.f32 %v3282_v21, 1e-05  ;;  %v3695_v40 = vmax.f32 %v3284_v18, 1e-05  ;;  %v948_v29 = vmul.f32 %v919_v61, %v2802_v1 }
 0x19e   : > { %v2434_v14 = vpop.eup %2433  ;;  %v2217_v6 = vround.rtne.f32 %v947_v30  ;;  %v921_v36 = vmul.f32 127.0, %v2432_v10  ;;  %2139 = vmatmul.mubr.msk.bf16.gmra.mrb[4].mxu1 %vm321_vm0, %v608_v20 }
 0x19f   : > { %v923_v17 = vmul.f32 127.0, %v2434_v14  ;;  %2443 = vrcp.f32 %v3690_v38  ;;  %2147 = vmatpush3.bf16.msra.mxu1 %v2327_v25  ;;  %v2218_v10 = vround.rtne.f32 %v948_v29 }
 0x1a0   : > { %v949_v51 = vmul.f32 %v921_v36, %v2826_v60  ;;  %2445 = vrcp.f32 %v3695_v40  ;;  %v3298_v32 = vpop.xlane.xlu1 %884  ;;  %v3300_v16 = vpop.xlane.xlu0 %887  ;;  %2148 = vmatprep.subr.bf16.mxu1 %v2328_v37  ;;  %v978_v56 = vpack.c.bf16 %v2217_v6, %v2216_v28 }
 0x1a1   : > { %v2436_v1 = vpop.eup %2435  ;;  %v3692_v61 = vmax.f32 %v3298_v32, 1e-05  ;;  %v3691_v30 = vmax.f32 %v3300_v16, 1e-05  ;;  %v950_v25 = vmul.f32 %v923_v17, %v2830_v62 }
 0x1a2   : > { %v2438_v20 = vpop.eup %2437  ;;  %v2219_v14 = vround.rtne.f32 %v949_v51  ;;  %v925_v60 = vmul.f32 127.0, %v2436_v1  ;;  %2150 = vmatprep.mubr.msk.bf16.mxu1 %vm321_vm0, %v978_v56 }
 0x1a3   : > { %v927_v36 = vmul.f32 127.0, %v2438_v20  ;;  %2447 = vrcp.f32 %v3692_v61  ;;  %2149 = vmatpush3.bf16.msra.mxu1 %v2328_v37  ;;  %v2220_v1 = vround.rtne.f32 %v950_v25 }
 0x1a4   : > { %v979_v38 = vpack.c.bf16 %v2219_v14, %v2218_v10  ;;  %v951_v28 = vmul.f32 %v925_v60, %v2834_v50  ;;  %2449 = vrcp.f32 %v3691_v30  ;;  %v3311_v6 = vpop.xlane.xlu1 %890  ;;  %v3313_v29 = vpop.xlane.xlu0 %893 }
 0x1a5   : > { %v2440_v51 = vpop.eup %2439  ;;  %v3693_v62 = vmax.f32 %v3311_v6, 1e-05  ;;  %v3694_v17 = vmax.f32 %v3313_v29, 1e-05  ;;  %v952_v37 = vmul.f32 %v927_v36, %v2838_v35 }
 0x1a6   : > { %v2442_v56 = vpop.eup %2441  ;;  %v2221_v20 = vround.rtne.f32 %v951_v28  ;;  %v929_v10 = vmul.f32 127.0, %v2440_v51  ;;  %2151 = vmatmul.mubr.msk.bf16.vlgmr.msra.gmra.mrb[8].mxu1 %vm321_vm0, %v979_v38 }
 0x1a7   : > { %v931_v50 = vmul.f32 127.0, %v2442_v56  ;;  %2451 = vrcp.f32 %v3693_v62  ;;  %v2222_v35 = vround.rtne.f32 %v952_v37 }
 0x1a8   : > { %v953_v14 = vmul.f32 %v929_v10, %v2846_v8  ;;  %2453 = vrcp.f32 %v3694_v17  ;;  %v3324_v60 = vpop.xlane.xlu1 %896  ;;  %v980_v30 = vpack.c.bf16 %v2221_v20, %v2220_v1 }
 0x1a9   : > { %v2444_v61 = vpop.eup %2443  ;;  %v3696_v25 = vmax.f32 %v3324_v60, 1e-05  ;;  %v954_v38 = vmul.f32 %v931_v50, %v2952_v3 }
 0x1aa   : > { %v2446_v28 = vpop.eup %2445  ;;  %v2223_v36 = vround.rtne.f32 %v953_v14  ;;  %v933_v51 = vmul.f32 127.0, %v2444_v61  ;;  %2154 = vmatprep.mubr.msk.bf16.mxu1 %vm321_vm0, %v980_v30 }
 0x1ab   : > { %v935_v56 = vmul.f32 127.0, %v2446_v28  ;;  %2455 = vrcp.f32 %v3696_v25  ;;  %v2224_v20 = vround.rtne.f32 %v954_v38  ;;  %v3709_v38 = vld [vmem:[#allocation2_spill] sm:$0xff] }
 0x1ac   : > { %v955_v8 = vmul.f32 %v933_v51, %v2956_v48  ;;  %v981_v10 = vpack.c.bf16 %v2223_v36, %v2222_v35 }
 0x1ad   : > { %v2448_v62 = vpop.eup %2447  ;;  %v956_v40 = vmul.f32 %v935_v56, %v2960_v7 }
 0x1ae   : > { %v2450_v1 = vpop.eup %2449  ;;  %v2225_v17 = vround.rtne.f32 %v955_v8  ;;  %v937_v37 = vmul.f32 127.0, %v2448_v62  ;;  %2155 = vmatmul.mubr.msk.bf16.gmra.mrb[12].mxu1 %vm321_vm0, %v981_v10  ;;  %v3710_v10 = vld [vmem:[#allocation3_spill] sm:$0xff] }
 0x1af   : > { %v939_v3 = vmul.f32 127.0, %v2450_v1  ;;  %v2226_v28 = vround.rtne.f32 %v956_v40  ;;  %v3711_v40 = vld [vmem:[#allocation4_spill] sm:$0xff] }
 0x1b0   : > { %v957_v61 = vmul.f32 %v937_v37, %v2972_v19  ;;  %v982_v30 = vpack.c.bf16 %v2225_v17, %v2224_v20 }
 0x1b1   : > { %v2452_v50 = vpop.eup %2451  ;;  %v958_v48 = vmul.f32 %v939_v3, %v2976_v44 }
 0x1b2   : > { %v2454_v14 = vpop.eup %2453  ;;  %v2227_v25 = vround.rtne.f32 %v957_v61  ;;  %v941_v35 = vmul.f32 127.0, %v2452_v50  ;;  %2158 = vmatprep.mubr.msk.bf16.mxu1 %vm321_vm0, %v982_v30 }
 0x1b3   : > { %v943_v36 = vmul.f32 127.0, %v2454_v14  ;;  %v2228_v56 = vround.rtne.f32 %v958_v48  ;;  %v3714_v14 = vld [vmem:[#allocation5_spill] sm:$0xff] }
 0x1b4   : > { %v959_v51 = vmul.f32 %v941_v35, %v3709_v38  ;;  %v983_v7 = vpack.c.bf16 %v2227_v25, %v2226_v28  ;;  %v3712_v25 = vld [vmem:[#allocation7_spill] sm:$0xff]  ;;  %v3715_v28 = vmax.f32 %v3714_v14, 1e-05  ;;  %v3347_v35 = vstv %s2215_s8 }
 0x1b5   : > { %v2456_v62 = vpop.eup %2455  ;;  %v960_v19 = vmul.f32 %v943_v36, %v3710_v10  ;;  %v3713_v61 = vmax.f32 %v3712_v25, 1e-05  ;;  %v3718_v10 = vld [vmem:[#allocation6_spill] sm:$0xff]  ;;  %v3720_v14 = vld [vmem:[#allocation11_spill] sm:$0xff] }
 0x1b6   : > { %v2229_v8 = vround.rtne.f32 %v959_v51  ;;  %v945_v17 = vmul.f32 127.0, %v2456_v62  ;;  %2159 = vmatmul.mubr.msk.bf16.gmra.mrb[16].mxu1 %vm321_vm0, %v983_v7  ;;  %v762_v48 = vmul.f32 0.007874016, %v3715_v28  ;;  %v3716_v51 = vld [vmem:[#allocation8_spill] sm:$0xff]  ;;  %v3721_v28 = vmax.f32 %v3720_v14, 1e-05 }
 0x1b7   : > { %v2230_v44 = vround.rtne.f32 %v960_v19  ;;  %v764_v30 = vmul.f32 0.007874016, %v3713_v61  ;;  %v3717_v7 = vmax.f32 %v3716_v51, 1e-05  ;;  %v3719_v19 = vmax.f32 %v3718_v10, 1e-05 }
 0x1b8   : > { %v961_v1 = vmul.f32 %v945_v17, %v3711_v40  ;;  %v984_v20 = vpack.c.bf16 %v2229_v8, %v2228_v56  ;;  %v3722_v51 = vld [vmem:[#allocation9_spill] sm:$0xff]  ;;  %v3724_v10 = vld [vmem:[#allocation12_spill] sm:$0xff] }
 0x1b9   : > { %v765_v62 = vmul.f32 0.007874016, %v3717_v7  ;;  %v763_v17 = vmul.f32 0.007874016, %v3719_v19  ;;  %v3723_v7 = vmax.f32 %v3722_v51, 1e-05 }
 0x1ba   : > { %v2231_v37 = vround.rtne.f32 %v961_v1  ;;  %2162 = vmatprep.mubr.msk.bf16.mxu1 %vm321_vm0, %v984_v20  ;;  %v3725_v19 = vmax.f32 %v3724_v10, 1e-05  ;;  %v3728_v51 = vmax.f32 %v3059_v63, 1e-05  ;;  %v3401_v63 = vstv %s2251_s14 }
 0x1bc   : > { %v985_v3 = vpack.c.bf16 %v2231_v37, %v2230_v44 }
 0x1be   : > { %2163 = vmatmul.mubr.msk.bf16.gmra.mrb[20].mxu1 %vm321_vm0, %v985_v3 }
 0x239   : > { %v2128_v50 = vpop.f32.mrb[0].mxu0 }
 0x23a   : > { %v780_v36 = vmul.f32 %v2128_v50, %v764_v30  ;;  %v699_v38 = vpop.f32.mrb[1].mxu0 }
 0x23b   : > { %v778_v56 = vmul.f32 %v762_v48, %v699_v38  ;;  %v2129_v8 = vpop.f32.mrb[2].mxu0  ;;  %v768_v48 = vmul.f32 0.007874016, %v3721_v28 }
 0x23c   : > { %v800_v40 = vmul.f32 %v3347_v35, %v780_v36  ;;  %v781_v1 = vmul.f32 %v2129_v8, %v765_v62  ;;  %v702_v20 = vpop.f32.mrb[3].mxu0  ;;  %v766_v62 = vmul.f32 0.007874016, %v3723_v7  ;;  %v1520_v7 = vmul.f32 0.007874016, %v3728_v51 }
 0x23d   : > { %v798_v44 = vmul.f32 %v3347_v35, %v778_v56  ;;  %v779_v37 = vmul.f32 %v763_v17, %v702_v20  ;;  %v769_v17 = vmul.f32 0.007874016, %v3725_v19  ;;  %v3726_v20 = vld [vmem:[#allocation10_spill] sm:$0xff] }
 0x23e   : > { %v2052_v3 = vpack.c.bf16 %v800_v40, %v800_v40  ;;  %v801_v25 = vmul.f32 %v3347_v35, %v781_v1 }
 0x23f   : > { %v2050_v61 = vpack.c.bf16 %v798_v44, %v798_v44  ;;  %v799_v30 = vmul.f32 %v3347_v35, %v779_v37  ;;  %v3727_v44 = vmax.f32 %v3726_v20, 1e-05 }
 0x240   : > { %1637 = vst.msk [vmem:[%s3360_s12 + $0x8] sm:$0xf] %vm1634_vm1, %v2052_v3  ;;  %v2053_v50 = vpack.c.bf16 %v801_v25, %v801_v25 }
 0x241   : > { %1635 = vst.msk [vmem:[%s3360_s12] sm:$0xf] %vm1634_vm1, %v2050_v61  ;;  %v2051_v36 = vpack.c.bf16 %v799_v30, %v799_v30  ;;  %v2132_v38 = vpop.f32.mrb[4].mxu0  ;;  %v767_v37 = vmul.f32 0.007874016, %v3727_v44 }
 0x242   : > { %1638 = vst.msk [vmem:[%s3360_s12 + $0xc] sm:$0xf] %vm1634_vm1, %v2053_v50  ;;  %v784_v56 = vmul.f32 %v2132_v38, %v768_v48  ;;  %v715_v8 = vpop.f32.mrb[5].mxu0 }
 0x243   : > { %1636 = vst.msk [vmem:[%s3360_s12 + $0x4] sm:$0xf] %vm1634_vm1, %v2051_v36  ;;  %v782_v40 = vmul.f32 %v766_v62, %v715_v8  ;;  %v2133_v1 = vpop.f32.mrb[6].mxu0  ;;  %v3729_v8 = vld [vmem:[#allocation13_spill] sm:$0xff] }
 0x244   : > { %v804_v3 = vmul.f32 %v3347_v35, %v784_v56  ;;  %v785_v25 = vmul.f32 %v2133_v1, %v769_v17  ;;  %v718_v61 = vpop.f32.mrb[7].mxu0  ;;  %v3730_v10 = vmax.f32 %v3729_v8, 1e-05  ;;  %v3731_v1 = vmax.f32 %v3070_v49, 1e-05 }
 0x245   : > { %v802_v30 = vmul.f32 %v3347_v35, %v782_v40  ;;  %v783_v50 = vmul.f32 %v767_v37, %v718_v61 }
 0x246   : > { %v2056_v14 = vpack.c.bf16 %v804_v3, %v804_v3  ;;  %v805_v28 = vmul.f32 %v3347_v35, %v785_v25  ;;  %v1518_v19 = vmul.f32 0.007874016, %v3730_v10  ;;  %v1521_v20 = vmul.f32 0.007874016, %v3731_v1 }
 0x247   : > { %v2054_v48 = vpack.c.bf16 %v802_v30, %v802_v30  ;;  %v803_v36 = vmul.f32 %v3347_v35, %v783_v50  ;;  %v3732_v3 = vmax.f32 %v3057_v54, 1e-05 }
 0x248   : > { %1641 = vst.msk [vmem:[%s3360_s12 + $0x18] sm:$0xf] %vm1634_vm1, %v2056_v14  ;;  %v2057_v38 = vpack.c.bf16 %v805_v28, %v805_v28 }
 0x249   : > { %1639 = vst.msk [vmem:[%s3360_s12 + $0x10] sm:$0xf] %vm1634_vm1, %v2054_v48  ;;  %v2055_v62 = vpack.c.bf16 %v803_v36, %v803_v36  ;;  %v2176_v56 = vpop.f32.mrb[8].mxu0  ;;  %v1519_v25 = vmul.f32 0.007874016, %v3732_v3 }
 0x24a   : > { %1642 = vst.msk [vmem:[%s3360_s12 + $0x1c] sm:$0xf] %vm1634_vm1, %v2057_v38  ;;  %v1536_v17 = vmul.f32 %v2176_v56, %v1520_v7  ;;  %v1455_v40 = vpop.f32.mrb[9].mxu0  ;;  %v3733_v36 = vmax.f32 %v3085_v24, 1e-05 }
 0x24b   : > { %1640 = vst.msk [vmem:[%s3360_s12 + $0x14] sm:$0xf] %vm1634_vm1, %v2055_v62  ;;  %v1534_v44 = vmul.f32 %v1518_v19, %v1455_v40  ;;  %v2177_v37 = vpop.f32.mrb[10].mxu0  ;;  %v3734_v62 = vmax.f32 %v3072_v34, 1e-05 }
 0x24c   : > { %v1537_v61 = vmul.f32 %v2177_v37, %v1521_v20  ;;  %v1458_v30 = vpop.f32.mrb[11].mxu0  ;;  %v1556_v28 = vmul.f32 %v3401_v63, %v1536_v17  ;;  %v1524_v38 = vmul.f32 0.007874016, %v3733_v36  ;;  %v3735_v19 = vmax.f32 %v3100_v52, 1e-05 }
 0x24d   : > { %v1535_v50 = vmul.f32 %v1519_v25, %v1458_v30  ;;  %v1554_v49 = vmul.f32 %v3401_v63, %v1534_v44  ;;  %v1522_v54 = vmul.f32 0.007874016, %v3734_v62  ;;  %v3736_v24 = vmax.f32 %v3083_v27, 1e-05 }
 0x24e   : > { %v1557_v14 = vmul.f32 %v3401_v63, %v1537_v61  ;;  %v1525_v17 = vmul.f32 0.007874016, %v3735_v19  ;;  %v1528_v52 = vmul.f32 0.007874016, %v1286_v5 }
 0x24f   : > { %v1555_v48 = vmul.f32 %v3401_v63, %v1535_v50  ;;  %v1523_v20 = vmul.f32 0.007874016, %v3736_v24 }
 0x250   : > { %v2277_v51 = vpack.i.bf16 %v1557_v14, %v1556_v28  ;;  %v3737_v28 = vmax.f32 %v3102_v22, 1e-05 }
 0x251   : > { %v2180_v7 = vpop.f32.mrb[12].mxu0  ;;  %v2282_v56 = vpack.i.bf16 %v1555_v48, %v1554_v49 }
 0x252   : > { %v1540_v8 = vmul.f32 %v2180_v7, %v1524_v38  ;;  %2278 = vrot.lane.b32.xlu1 %v2277_v51, %s2481_s15  ;;  %v1471_v10 = vpop.f32.mrb[13].mxu0  ;;  %v1526_v27 = vmul.f32 0.007874016, %v3737_v28  ;;  %v3738_v38 = vmax.f32 %v3132_v42, 1e-05 }
 0x253   : > { %v1538_v40 = vmul.f32 %v1522_v54, %v1471_v10  ;;  %2283 = vrot.lane.b32.xlu0 %v2282_v56, %s2481_s15  ;;  %v2181_v1 = vpop.f32.mrb[14].mxu0  ;;  %v3739_v54 = vmax.f32 %v3116_v11, 1e-05  ;;  %v3740_v42 = vmax.f32 %v3147_v0, 1e-05 }
 0x254   : > { %v1541_v44 = vmul.f32 %v2181_v1, %v1525_v17  ;;  %v1474_v37 = vpop.f32.mrb[15].mxu0  ;;  %v1560_v3 = vmul.f32 %v3401_v63, %v1540_v8  ;;  %v1529_v51 = vmul.f32 0.007874016, %v3738_v38  ;;  %v3741_v11 = vmax.f32 %v3134_v33, 1e-05 }
 0x255   : > { %v1539_v34 = vmul.f32 %v1523_v20, %v1474_v37  ;;  %v1558_v61 = vmul.f32 %v3401_v63, %v1538_v40  ;;  %v1527_v56 = vmul.f32 0.007874016, %v3739_v54  ;;  %v1532_v40 = vmul.f32 0.007874016, %v3740_v42 }
 0x256   : > { %v1561_v25 = vmul.f32 %v3401_v63, %v1541_v44  ;;  %v1530_v20 = vmul.f32 0.007874016, %v3741_v11  ;;  %v3743_v0 = vmax.f32 %v3145_v59, 1e-05 }
 0x257   : > { %v1559_v30 = vmul.f32 %v3401_v63, %v1539_v34 }
 0x258   : > { %v2287_v50 = vpack.i.bf16 %v1561_v25, %v1560_v3  ;;  %v3742_v3 = vmax.f32 %v3158_v57, 1e-05  ;;  %v3744_v57 = vmax.f32 %v3173_v58, 1e-05 }
 0x259   : > { %v2184_v14 = vpop.f32.mrb[16].mxu0  ;;  %v2292_v48 = vpack.i.bf16 %v1559_v30, %v1558_v61 }
 0x25a   : > { %v1544_v49 = vmul.f32 %v2184_v14, %v1528_v52  ;;  %2288 = vrot.lane.b32.xlu1 %v2287_v50, %s2481_s15  ;;  %v1487_v36 = vpop.f32.mrb[17].mxu0  ;;  %v1533_v25 = vmul.f32 0.007874016, %v3742_v3  ;;  %v1531_v52 = vmul.f32 0.007874016, %v3743_v0 }
 0x25b   : > { %v1542_v7 = vmul.f32 %v1526_v27, %v1487_v36  ;;  %v2185_v62 = vpop.f32.mrb[18].mxu0  ;;  %v772_v36 = vmul.f32 0.007874016, %v3744_v57 }
 0x25c   : > { %v1545_v41 = vmul.f32 %v2185_v62, %v1529_v51  ;;  %v1490_v5 = vpop.f32.mrb[19].mxu0  ;;  %v1564_v10 = vmul.f32 %v3401_v63, %v1544_v49 }
 0x25d   : > { %v1543_v8 = vmul.f32 %v1527_v56, %v1490_v5  ;;  %v1562_v19 = vmul.f32 %v3401_v63, %v1542_v7  ;;  %v3745_v7 = vmax.f32 %v3160_v15, 1e-05 }
 0x25e   : > { %v1565_v22 = vmul.f32 %v3401_v63, %v1545_v41  ;;  %2293 = vrot.lane.b32.xlu1 %v2292_v48, %s2481_s15  ;;  %v3746_v41 = vmax.f32 %v3184_v12, 1e-05 }
 0x25f   : > { %v1563_v17 = vmul.f32 %v3401_v63, %v1543_v8  ;;  %v770_v59 = vmul.f32 0.007874016, %v3745_v7 }
 0x260   : > { %v2297_v1 = vpack.i.bf16 %v1565_v22, %v1564_v10  ;;  %v773_v5 = vmul.f32 0.007874016, %v3746_v41 }
 0x261   : > { %v2188_v24 = vpop.f32.mrb[20].mxu0  ;;  %v2302_v44 = vpack.i.bf16 %v1563_v17, %v1562_v19 }
 0x262   : > { %v1548_v37 = vmul.f32 %v2188_v24, %v1532_v40  ;;  %2298 = vrot.lane.b32.xlu1 %v2297_v1, %s2481_s15  ;;  %v1503_v34 = vpop.f32.mrb[21].mxu0 }
 0x263   : > { %v1546_v61 = vmul.f32 %v1530_v20, %v1503_v34  ;;  %2303 = vrot.lane.b32.xlu0 %v2302_v44, %s2481_s15  ;;  %v2189_v30 = vpop.f32.mrb[22].mxu0  ;;  %v3749_v34 = vmax.f32 %v3186_v4, 1e-05 }
 0x264   : > { %v1549_v50 = vmul.f32 %v2189_v30, %v1533_v25  ;;  %v1506_v14 = vpop.f32.mrb[23].mxu0  ;;  %v1568_v33 = vmul.f32 %v3401_v63, %v1548_v37  ;;  %v3750_v30 = vmax.f32 %v3210_v26, 1e-05 }
 0x265   : > { %v1547_v28 = vmul.f32 %v1531_v52, %v1506_v14  ;;  %v1566_v48 = vmul.f32 %v3401_v63, %v1546_v61  ;;  %v774_v3 = vmul.f32 0.007874016, %v3749_v34 }
 0x266   : > { %v1569_v27 = vmul.f32 %v3401_v63, %v1549_v50  ;;  %v777_v0 = vmul.f32 0.007874016, %v3750_v30  ;;  %v3751_v50 = vmax.f32 %v3197_v45, 1e-05 }
 0x267   : > { %v1567_v49 = vmul.f32 %v3401_v63, %v1547_v28  ;;  %v3747_v63 = vmax.f32 %v3171_v43, 1e-05  ;;  %v3748_v43 = vmax.f32 %v3199_v53, 1e-05 }
 0x268   : > { %v2312_v38 = vpack.i.bf16 %v1569_v27, %v1568_v33  ;;  %v775_v14 = vmul.f32 0.007874016, %v3751_v50  ;;  %v3760_v50 = vmax.f32 %v3284_v18, 1e-05 }
 0x269   : > { %v2136_v51 = vpop.f32.mrb[0].mxu1  ;;  %v2307_v62 = vpack.i.bf16 %v1567_v49, %v1566_v48  ;;  %v771_v10 = vmul.f32 0.007874016, %v3747_v63  ;;  %v776_v20 = vmul.f32 0.007874016, %v3748_v43 }
 0x26a   : > { %v788_v54 = vmul.f32 %v2136_v51, %v772_v36  ;;  %2313 = vrot.lane.b32.xlu1 %v2312_v38, %s2481_s15  ;;  %v731_v56 = vpop.f32.mrb[1].mxu1  ;;  %v3752_v38 = vmax.f32 %v3224_v9, 1e-05  ;;  %v3755_v63 = vmax.f32 %v3222_v39, 1e-05 }
 0x26b   : > { %v786_v8 = vmul.f32 %v770_v59, %v731_v56  ;;  %2308 = vrot.lane.b32.xlu0 %v2307_v62, %s2481_s15  ;;  %v2137_v58 = vpop.f32.mrb[2].mxu1  ;;  %v3753_v62 = vmax.f32 %v3212_v2, 1e-05 }
 0x26c   : > { %v808_v15 = vmul.f32 %v3347_v35, %v788_v54  ;;  %v789_v22 = vmul.f32 %v2137_v58, %v773_v5  ;;  %v734_v19 = vpop.f32.mrb[3].mxu1  ;;  %v1142_v51 = vmul.f32 0.007874016, %v3752_v38  ;;  %v3754_v5 = vmax.f32 %v3236_v46, 1e-05 }
 0x26d   : > { %v806_v17 = vmul.f32 %v3347_v35, %v786_v8  ;;  %v787_v42 = vmul.f32 %v771_v10, %v734_v19  ;;  %v1140_v54 = vmul.f32 0.007874016, %v3753_v62  ;;  %v1174_v8 = vstv %s3384_s13 }
 0x26e   : > { %v2060_v40 = vpack.c.bf16 %v808_v15, %v808_v15  ;;  %v809_v12 = vmul.f32 %v3347_v35, %v789_v22  ;;  %v1141_v10 = vmul.f32 0.007874016, %v3755_v63  ;;  %v3756_v46 = vmax.f32 %v3251_v55, 1e-05 }
 0x26f   : > { %v2058_v1 = vpack.c.bf16 %v806_v17, %v806_v17  ;;  %v807_v24 = vmul.f32 %v3347_v35, %v787_v42  ;;  %v3764_v62 = vmax.f32 %v3313_v29, 1e-05 }
 0x270   : > { %1645 = vst.msk [vmem:[%s3360_s12 + $0x28] sm:$0xf] %vm1634_vm1, %v2060_v40  ;;  %v2061_v11 = vpack.c.bf16 %v809_v12, %v809_v12  ;;  %v1146_v12 = vmul.f32 0.007874016, %v3756_v46 }
 0x271   : > { %1643 = vst.msk [vmem:[%s3360_s12 + $0x20] sm:$0xf] %vm1634_vm1, %v2058_v1  ;;  %v2059_v44 = vpack.c.bf16 %v807_v24, %v807_v24  ;;  %v2140_v37 = vpop.f32.mrb[4].mxu1  ;;  %v3757_v24 = vmax.f32 %v3238_v23, 1e-05 }
 0x272   : > { %1646 = vst.msk [vmem:[%s3360_s12 + $0x2c] sm:$0xf] %vm1634_vm1, %v2061_v11  ;;  %v792_v25 = vmul.f32 %v2140_v37, %v776_v20  ;;  %v747_v61 = vpop.f32.mrb[5].mxu1  ;;  %v3758_v20 = vmax.f32 %v3266_v47, 1e-05 }
 0x273   : > { %1644 = vst.msk [vmem:[%s3360_s12 + $0x24] sm:$0xf] %vm1634_vm1, %v2059_v44  ;;  %v790_v53 = vmul.f32 %v774_v3, %v747_v61  ;;  %v2141_v52 = vpop.f32.mrb[6].mxu1  ;;  %v1144_v11 = vmul.f32 0.007874016, %v3757_v24 }
 0x274   : > { %v812_v28 = vmul.f32 %v3347_v35, %v792_v25  ;;  %v793_v4 = vmul.f32 %v2141_v52, %v777_v0  ;;  %v750_v33 = vpop.f32.mrb[7].mxu1  ;;  %v1147_v44 = vmul.f32 0.007874016, %v3758_v20  ;;  %v3759_v3 = vmax.f32 %v3249_v13, 1e-05 }
 0x275   : > { %v810_v27 = vmul.f32 %v3347_v35, %v790_v53  ;;  %v791_v48 = vmul.f32 %v775_v14, %v750_v33  ;;  %v1150_v14 = vmul.f32 0.007874016, %v3760_v50 }
 0x276   : > { %v2064_v49 = vpack.c.bf16 %v812_v28, %v812_v28  ;;  %v813_v26 = vmul.f32 %v3347_v35, %v793_v4  ;;  %v1145_v25 = vmul.f32 0.007874016, %v3759_v3  ;;  %v3761_v28 = vmax.f32 %v3268_v31, 1e-05 }
 0x277   : > { %v2062_v57 = vpack.c.bf16 %v810_v27, %v810_v27  ;;  %v811_v36 = vmul.f32 %v3347_v35, %v791_v48  ;;  %v1143_v35 = vmul.f32 0.007874016, %v3754_v5  ;;  %v3762_v27 = vmax.f32 %v3298_v32, 1e-05 }
 0x278   : > { %1649 = vst.msk [vmem:[%s3360_s12 + $0x38] sm:$0xf] %vm1634_vm1, %v2064_v49  ;;  %v2065_v45 = vpack.c.bf16 %v813_v26, %v813_v26  ;;  %v1148_v4 = vmul.f32 0.007874016, %v3761_v28  ;;  %v1154_v32 = vmul.f32 0.007874016, %v3764_v62 }
 0x279   : > { %1647 = vst.msk [vmem:[%s3360_s12 + $0x30] sm:$0xf] %vm1634_vm1, %v2062_v57  ;;  %v2063_v7 = vpack.c.bf16 %v811_v36, %v811_v36  ;;  %v2152_v59 = vpop.f32.mrb[8].mxu1  ;;  %v1151_v48 = vmul.f32 0.007874016, %v3762_v27 }
 0x27a   : > { %1650 = vst.msk [vmem:[%s3360_s12 + $0x3c] sm:$0xf] %vm1634_vm1, %v2065_v45  ;;  %v1158_v56 = vmul.f32 %v2152_v59, %v1142_v51  ;;  %v1077_v41 = vpop.f32.mrb[9].mxu1  ;;  %v3763_v57 = vmax.f32 %v3282_v21, 1e-05 }
 0x27b   : > { %1648 = vst.msk [vmem:[%s3360_s12 + $0x34] sm:$0xf] %vm1634_vm1, %v2063_v7  ;;  %v1156_v58 = vmul.f32 %v1140_v54, %v1077_v41  ;;  %v2153_v9 = vpop.f32.mrb[10].mxu1 }
 0x27c   : > { %v3502_v15 = vmul.f32 %v1174_v8, %v1158_v56  ;;  %v1159_v22 = vmul.f32 %v2153_v9, %v1143_v35  ;;  %v1080_v2 = vpop.f32.mrb[11].mxu1  ;;  %v1149_v36 = vmul.f32 0.007874016, %v3763_v57  ;;  %v3765_v56 = vmax.f32 %v3300_v16, 1e-05 }
 0x27d   : > { %v3504_v19 = vmul.f32 %v1174_v8, %v1156_v58  ;;  %v1157_v17 = vmul.f32 %v1141_v10, %v1080_v2  ;;  %v3766_v35 = vmax.f32 %v3324_v60, 1e-05  ;;  %v3767_v10 = vmax.f32 %v3311_v6, 1e-05 }
 0x27e   : > { %v1179_v42 = vmul.f32 %v1174_v8, %v1159_v22  ;;  %v1152_v41 = vmul.f32 0.007874016, %v3765_v56 }
 0x27f   : > { %v3506_v40 = vmul.f32 %v1174_v8, %v1157_v17  ;;  %v1155_v58 = vmul.f32 0.007874016, %v3766_v35  ;;  %v1153_v22 = vmul.f32 0.007874016, %v3767_v10 }
 0x281   : > { %v2156_v1 = vpop.f32.mrb[12].mxu1 }
 0x282   : > { %v1162_v43 = vmul.f32 %v2156_v1, %v1146_v12  ;;  %v1093_v39 = vpop.f32.mrb[13].mxu1 }
 0x283   : > { %v1160_v37 = vmul.f32 %v1144_v11, %v1093_v39  ;;  %v2157_v34 = vpop.f32.mrb[14].mxu1 }
 0x284   : > { %v3516_v61 = vmul.f32 %v1174_v8, %v1162_v43  ;;  %v1163_v30 = vmul.f32 %v2157_v34, %v1147_v44  ;;  %v1096_v0 = vpop.f32.mrb[15].mxu1 }
 0x285   : > { %v3518_v55 = vmul.f32 %v1174_v8, %v1160_v37  ;;  %v1161_v53 = vmul.f32 %v1145_v25, %v1096_v0 }
 0x286   : > { %v1183_v52 = vmul.f32 %v1174_v8, %v1163_v30 }
 0x287   : > { %v3520_v23 = vmul.f32 %v1174_v8, %v1161_v53 }
 0x289   : > { %v2160_v47 = vpop.f32.mrb[16].mxu1 }
 0x28a   : > { %v1166_v33 = vmul.f32 %v2160_v47, %v1150_v14  ;;  %v1109_v13 = vpop.f32.mrb[17].mxu1 }
 0x28b   : > { %v1164_v49 = vmul.f32 %v1148_v4, %v1109_v13  ;;  %v2161_v26 = vpop.f32.mrb[18].mxu1 }
 0x28c   : > { %v3530_v45 = vmul.f32 %v1174_v8, %v1166_v33  ;;  %v1167_v38 = vmul.f32 %v2161_v26, %v1151_v48  ;;  %v1112_v51 = vpop.f32.mrb[19].mxu1 }
 0x28d   : > { %v3532_v18 = vmul.f32 %v1174_v8, %v1164_v49  ;;  %v1165_v7 = vmul.f32 %v1149_v36, %v1112_v51 }
 0x28e   : > { %v3534_v59 = vmul.f32 %v1174_v8, %v1167_v38 }
 0x28f   : > { %v3536_v31 = vmul.f32 %v1174_v8, %v1165_v7 }
 0x291   : > { %v2164_v54 = vpop.f32.mrb[20].mxu1 }
 0x292   : > { %v1170_v21 = vmul.f32 %v2164_v54, %v1154_v32  ;;  %v1125_v5 = vpop.f32.mrb[21].mxu1 }
 0x293   : > { %v1168_v9 = vmul.f32 %v1152_v41, %v1125_v5  ;;  %v2165_v63 = vpop.f32.mrb[22].mxu1 }
 0x294   : > { %v3546_v2 = vmul.f32 %v1174_v8, %v1170_v21  ;;  %v1171_v17 = vmul.f32 %v2165_v63, %v1155_v58  ;;  %v1128_v29 = vpop.f32.mrb[23].mxu1 }
 0x295   : > { %v3548_v46 = vmul.f32 %v1174_v8, %v1168_v9  ;;  %v1169_v12 = vmul.f32 %v1153_v22, %v1128_v29 }
 0x296   : > { %v3550_v16 = vmul.f32 %v1174_v8, %v1171_v17 }
 0x297   : > { %v3552_v1 = vmul.f32 %v1174_v8, %v1169_v12 }
 0x2c4   : > { %v2279_v60 = vpop.permute.xlu1 %2278 }
 0x2c5   : > { %v2281_v24 = vunpack.i.h.bf16 %v2279_v60  ;;  %v2280_v11 = vunpack.i.l.bf16 %v2279_v60  ;;  %v2284_v43 = vpop.permute.xlu0 %2283 }
 0x2c6   : > { %v2286_v39 = vunpack.i.h.bf16 %v2284_v43  ;;  %v2285_v6 = vunpack.i.l.bf16 %v2284_v43 }
 0x2c7   : > { %v1718_v8 = vsel %vm1715_vm2, %v3502_v15, %v2280_v11  ;;  %v1719_v20 = vsel %vm1715_vm2, %v1179_v42, %v2281_v24 }
 0x2c8   : > { %v2068_v44 = vpack.c.bf16 %v1718_v8, %v1718_v8  ;;  %v2069_v37 = vpack.c.bf16 %v1719_v20, %v1719_v20  ;;  %v1717_v34 = vsel %vm1715_vm2, %v3506_v40, %v2286_v39  ;;  %v1716_v3 = vsel %vm1715_vm2, %v3504_v19, %v2285_v6 }
 0x2c9   : > { %v2067_v25 = vpack.c.bf16 %v1717_v34, %v1717_v34  ;;  %v2066_v30 = vpack.c.bf16 %v1716_v3, %v1716_v3 }
 0x2ca   : > { %1799 = vst.msk [vmem:[%s3559_s22 + $0x8] sm:$0xf] %vm1796_vm3, %v2068_v44  ;;  %1800 = vst.msk [vmem:[%s3559_s22 + $0xc] sm:$0xf] %vm1796_vm3, %v2069_v37 }
 0x2cb   : > { %1798 = vst.msk [vmem:[%s3559_s22 + $0x4] sm:$0xf] %vm1796_vm3, %v2067_v25  ;;  %1797 = vst.msk [vmem:[%s3559_s22] sm:$0xf] %vm1796_vm3, %v2066_v30 }
 0x2cc   : > { %v2289_v15 = vpop.permute.xlu1 %2288 }
 0x2cd   : > { %v2291_v42 = vunpack.i.h.bf16 %v2289_v15  ;;  %v2290_v0 = vunpack.i.l.bf16 %v2289_v15 }
 0x2cf   : > { %v1722_v40 = vsel %vm1715_vm2, %v3516_v61, %v2290_v0  ;;  %v1723_v19 = vsel %vm1715_vm2, %v1183_v52, %v2291_v42 }
 0x2d0   : > { %v2072_v53 = vpack.c.bf16 %v1722_v40, %v1722_v40  ;;  %v2073_v50 = vpack.c.bf16 %v1723_v19, %v1723_v19  ;;  %v2294_v14 = vpop.permute.xlu1 %2293 }
 0x2d1   : > { %v2296_v47 = vunpack.i.h.bf16 %v2294_v14  ;;  %v2295_v28 = vunpack.i.l.bf16 %v2294_v14 }
 0x2d2   : > { %1803 = vst.msk [vmem:[%s3559_s22 + $0x18] sm:$0xf] %vm1796_vm3, %v2072_v53  ;;  %1804 = vst.msk [vmem:[%s3559_s22 + $0x1c] sm:$0xf] %vm1796_vm3, %v2073_v50 }
 0x2d3   : > { %v1720_v4 = vsel %vm1715_vm2, %v3518_v55, %v2295_v28  ;;  %v1721_v33 = vsel %vm1715_vm2, %v3520_v23, %v2296_v47 }
 0x2d4   : > { %v2070_v61 = vpack.c.bf16 %v1720_v4, %v1720_v4  ;;  %v2071_v13 = vpack.c.bf16 %v1721_v33, %v1721_v33  ;;  %v2299_v52 = vpop.permute.xlu1 %2298 }
 0x2d5   : > { %v2301_v27 = vunpack.i.h.bf16 %v2299_v52  ;;  %v2300_v48 = vunpack.i.l.bf16 %v2299_v52  ;;  %v2304_v49 = vpop.permute.xlu0 %2303 }
 0x2d6   : > { %1801 = vst.msk [vmem:[%s3559_s22 + $0x10] sm:$0xf] %vm1796_vm3, %v2070_v61  ;;  %1802 = vst.msk [vmem:[%s3559_s22 + $0x14] sm:$0xf] %vm1796_vm3, %v2071_v13  ;;  %v2306_v26 = vunpack.i.h.bf16 %v2304_v49  ;;  %v2305_v57 = vunpack.i.l.bf16 %v2304_v49 }
 0x2d7   : > { %v1726_v55 = vsel %vm1715_vm2, %v3530_v45, %v2300_v48  ;;  %v1727_v23 = vsel %vm1715_vm2, %v3534_v59, %v2301_v27 }
 0x2d8   : > { %v2076_v36 = vpack.c.bf16 %v1726_v55, %v1726_v55  ;;  %v2077_v38 = vpack.c.bf16 %v1727_v23, %v1727_v23  ;;  %v1725_v51 = vsel %vm1715_vm2, %v3536_v31, %v2306_v26  ;;  %v1724_v7 = vsel %vm1715_vm2, %v3532_v18, %v2305_v57 }
 0x2d9   : > { %v2075_v62 = vpack.c.bf16 %v1725_v51, %v1725_v51  ;;  %v2074_v32 = vpack.c.bf16 %v1724_v7, %v1724_v7 }
 0x2da   : > { %1807 = vst.msk [vmem:[%s3559_s22 + $0x28] sm:$0xf] %vm1796_vm3, %v2076_v36  ;;  %1808 = vst.msk [vmem:[%s3559_s22 + $0x2c] sm:$0xf] %vm1796_vm3, %v2077_v38 }
 0x2db   : > { %1806 = vst.msk [vmem:[%s3559_s22 + $0x24] sm:$0xf] %vm1796_vm3, %v2075_v62  ;;  %1805 = vst.msk [vmem:[%s3559_s22 + $0x20] sm:$0xf] %vm1796_vm3, %v2074_v32 }
 0x2dc   : > { %v2314_v45 = vpop.permute.xlu1 %2313 }
 0x2dd   : > { %v2316_v59 = vunpack.i.h.bf16 %v2314_v45  ;;  %v2315_v31 = vunpack.i.l.bf16 %v2314_v45  ;;  %v2309_v54 = vpop.permute.xlu0 %2308 }
 0x2de   : > { %v2311_v56 = vunpack.i.h.bf16 %v2309_v54  ;;  %v2310_v18 = vunpack.i.l.bf16 %v2309_v54 }
 0x2df   : > { %v1730_v41 = vsel %vm1715_vm2, %v3546_v2, %v2315_v31  ;;  %v1731_v21 = vsel %vm1715_vm2, %v3550_v16, %v2316_v59 }
 0x2e0   : > { %v2080_v5 = vpack.c.bf16 %v1730_v41, %v1730_v41  ;;  %v2081_v35 = vpack.c.bf16 %v1731_v21, %v1731_v21  ;;  %v1729_v58 = vsel %vm1715_vm2, %v3552_v1, %v2311_v56  ;;  %v1728_v9 = vsel %vm1715_vm2, %v3548_v46, %v2310_v18 }
 0x2e1   : > { %v2079_v63 = vpack.c.bf16 %v1729_v58, %v1729_v58  ;;  %v2078_v10 = vpack.c.bf16 %v1728_v9, %v1728_v9 }
 0x2e2   : > { %1811 = vst.msk [vmem:[%s3559_s22 + $0x38] sm:$0xf] %vm1796_vm3, %v2080_v5  ;;  %1812 = vst.msk [vmem:[%s3559_s22 + $0x3c] sm:$0xf] %vm1796_vm3, %v2081_v35 }
 0x2e3   : > { %1810 = vst.msk [vmem:[%s3559_s22 + $0x34] sm:$0xf] %vm1796_vm3, %v2079_v63  ;;  %1809 = vst.msk [vmem:[%s3559_s22 + $0x30] sm:$0xf] %vm1796_vm3, %v2078_v10 }
 0x2e4 PF: > { %s16_s20 = sadd.s32 1, %s2479_s20   ;;  %s3768_s18 = smov %s2475_s19 }
 0x2e5   : > { %p13_p5 = scmp.ge.s32.totalorder %s16_s20, 4   ;;  %s3769_s19 = smov %s3771_s21 }
 0x2e7   :  { %15 = sbr.rel (!%p13_p5) target bundleno = 2 (0x2), region = 80 }

</bundles_post_ra>
